<compile_context>
chip_gen: v5e
topology: v5e:2x2
jax: 0.10.0
libtpu: 0.0.40
codegen_flags: <defaults>
</compile_context>

<pallas_src>
import jax
import jax.numpy as jnp
from jax.experimental import pallas as pl
from jax.experimental.pallas import tpu as pltpu

# ----------------------- model configuration (small) -----------------------
B = 2               # batch
C = 3               # input channels (DINOv2 expects RGB)
IMG = 16            # image size
PATCH = 4           # patch size (stand-in for 14)
NP = (IMG // PATCH) ** 2          # patches per image = 16
R = 4               # register tokens (dinov2 *_reg uses 4)
D = 32              # embed dim (stand-in for 768)
NH = 2              # heads
DH = D // NH        # head dim
DEPTH = 2           # transformer blocks (stand-in for 12)
MLP = 4 * D         # mlp hidden
NUM_CLASSES = 5
SEQ = 1 + R + NP    # cls + registers + patches = 21
BS = B * SEQ        # flattened batch*seq rows = 42
CPP = C * PATCH * PATCH
LN_EPS = 1e-6
ATTN_SCALE = DH ** -0.5


# --------------------------- in-kernel helpers ------------------------------
def _ln(x, g, b, eps=LN_EPS):
    m = jnp.mean(x, axis=-1, keepdims=True)
    c = x - m
    v = jnp.mean(c * c, axis=-1, keepdims=True)
    return c * jax.lax.rsqrt(v + eps) * g + b


def _gelu(x):
    # exact (erf) GELU, matching torch.nn.GELU default
    return 0.5 * x * (1.0 + jax.lax.erf(x * (2.0 ** -0.5)))


def _bf16(x):
    return x.astype(jnp.bfloat16)


# --------------------------- fully fused kernel -----------------------------
def _model_kernel(patches_ref, pew_ref, stemb_ref, prefix_ref, abias_ref,
                  n1g_ref, n1b_ref,
                  qw_ref, qb_ref, kw_ref, kb_ref, vw_ref, vb_ref,
                  pw_ref, pb_ref, ls1_ref,
                  n2g_ref, n2b_ref,
                  f1w_ref, f1b_ref, f2w_ref, f2b_ref, ls2_ref,
                  ng_ref, nb_ref, hw_ref, hb_ref,
                  o_ref, x_scr):
    l = pl.program_id(0)

    # ---- stem: patch-embed matmul + pos + [cls|registers] prefix (step 0 only) ----
    @pl.when(l == 0)
    def _():
        tok = jnp.dot(patches_ref[...], pew_ref[...],
                      preferred_element_type=jnp.float32) + stemb_ref[...]   # (B*NP, D)
        for b in range(B):
            x_scr[b * SEQ:b * SEQ + 1 + R, :] = prefix_ref[...]
            x_scr[b * SEQ + 1 + R:(b + 1) * SEQ, :] = tok[b * NP:(b + 1) * NP, :]

    x = x_scr[...]                                                           # (B*SEQ, D) f32

    # ---- attention branch ----
    h = _bf16(_ln(x, n1g_ref[...], n1b_ref[...]))
    a = jnp.zeros((BS, D), jnp.float32)
    for hd in range(NH):                       # head-major weights: no lane slicing/concat
        q = jnp.dot(h, qw_ref[hd], preferred_element_type=jnp.float32) + qb_ref[hd]
        k = jnp.dot(h, kw_ref[hd], preferred_element_type=jnp.float32) + kb_ref[hd]
        v = jnp.dot(h, vw_ref[hd], preferred_element_type=jnp.float32) + vb_ref[hd]
        # q @ k^T without materializing a transpose (scale already folded into q weights)
        s = jax.lax.dot_general(_bf16(q), _bf16(k), (((1,), (1,)), ((), ())),
                                preferred_element_type=jnp.float32)
        s = s + abias_ref[...]                 # block-diagonal batch mask (0 / -1e9)
        s = s - jnp.max(s, axis=-1, keepdims=True)
        p = jnp.exp(s)
        p = p * pl.reciprocal(jnp.sum(p, axis=-1, keepdims=True), approx=True)
        pv = jnp.dot(_bf16(p), _bf16(v), preferred_element_type=jnp.float32)
        # head-merge folded into per-head proj matmul, accumulated in f32
        a = a + jnp.dot(_bf16(pv), pw_ref[hd], preferred_element_type=jnp.float32)
    a = a + pb_ref[...]
    x = x + a * ls1_ref[...]                   # LayerScale + residual (f32)

    # ---- MLP branch ----
    h = _bf16(_ln(x, n2g_ref[...], n2b_ref[...]))
    m = jnp.dot(h, f1w_ref[...], preferred_element_type=jnp.float32) + f1b_ref[...]
    m = jnp.dot(_bf16(_gelu(m)), f2w_ref[...],
                preferred_element_type=jnp.float32) + f2b_ref[...]
    x = x + m * ls2_ref[...]                   # LayerScale + residual (f32)

    x_scr[...] = x

    # ---- final norm + CLS select + classifier (last depth step only) ----
    @pl.when(l == pl.num_programs(0) - 1)
    def _():
        cls = jnp.concatenate([x[b * SEQ:b * SEQ + 1, :] for b in range(B)], axis=0)
        cls = _ln(cls, ng_ref[...], nb_ref[...])
        o_ref[...] = jnp.dot(_bf16(cls), hw_ref[...],
                             preferred_element_type=jnp.float32) + hb_ref[...]


# ------------------------------ pallas wrapper -------------------------------
def _const(shape):
    nd = len(shape)
    return pl.BlockSpec(shape, lambda l: (0,) * nd)


def _depth(shape):
    nd = len(shape)
    return pl.BlockSpec((None,) + shape, lambda l: (l,) + (0,) * nd)


def dinov2_pallas(patches2d, p):
    grid_spec = pltpu.PrefetchScalarGridSpec(
        num_scalar_prefetch=0,
        grid=(DEPTH,),
        in_specs=[
            _const((B * NP, CPP)),                               # patches (bf16)
            _const((CPP, D)),                                    # patch-embed weight
            _const((B * NP, D)),                                 # pe bias + pos (tiled)
            _const((1 + R, D)),                                  # cls(+pos)/register prefix
            _const((BS, BS)),                                    # block-diag attn bias
            _depth((1, D)), _depth((1, D)),                      # norm1 g/b
            _depth((NH, D, DH)), _depth((NH, 1, DH)),            # q w/b (scale folded)
            _depth((NH, D, DH)), _depth((NH, 1, DH)),            # k w/b
            _depth((NH, D, DH)), _depth((NH, 1, DH)),            # v w/b
            _depth((NH, DH, D)), _depth((1, D)),                 # proj w/b (head-major)
            _depth((1, D)),                                      # ls1
            _depth((1, D)), _depth((1, D)),                      # norm2 g/b
            _depth((D, MLP)), _depth((1, MLP)),                  # fc1 w/b
            _depth((MLP, D)), _depth((1, D)),                    # fc2 w/b
            _depth((1, D)),                                      # ls2
            _const((1, D)), _const((1, D)),                      # final norm g/b
            _const((D, NUM_CLASSES)), _const((1, NUM_CLASSES)),  # classifier w/b
        ],
        out_specs=pl.BlockSpec((B, NUM_CLASSES), lambda l: (0, 0)),
        scratch_shapes=[pltpu.VMEM((BS, D), jnp.float32)],       # resident activation
    )
    return pl.pallas_call(
        _model_kernel,
        out_shape=jax.ShapeDtypeStruct((B, NUM_CLASSES), jnp.float32),
        grid_spec=grid_spec,
        compiler_params=pltpu.CompilerParams(dimension_semantics=("arbitrary",)),
    )(patches2d,
      p["pe_w"], p["stem_bias"], p["prefix"], p["attn_bias"],
      p["n1_g"], p["n1_b"],
      p["q_w"], p["q_b"], p["k_w"], p["k_b"], p["v_w"], p["v_b"],
      p["proj_w"], p["proj_b"], p["ls1"],
      p["n2_g"], p["n2_b"],
      p["fc1_w"], p["fc1_b"], p["fc2_w"], p["fc2_b"], p["ls2"],
      p["norm_g"], p["norm_b"], p["head_w"], p["head_b"])


# ------------------------------- parameters ---------------------------------
def init_params(key):
    f32 = jnp.float32
    bf16 = jnp.bfloat16

    def w(k, shape, scale=0.02):
        return scale * jax.random.normal(k, shape, dtype=f32)

    ks = jax.random.split(key, 9)
    pe_w = w(ks[0], (CPP, D))                                   # pre-transposed
    pe_b = w(ks[1], (1, D))
    cls = w(ks[2], (1, D))
    reg = w(ks[3], (R, D))
    pos = w(ks[4], (1 + NP, D))

    # DINOv2 order: pos added to [cls, patches]; registers inserted after cls w/o pos.
    prefix = jnp.concatenate([cls + pos[:1], reg], axis=0)       # (1+R, D)
    stem_bias = jnp.tile(pos[1:] + pe_b, (B, 1))                 # (B*NP, D)

    # block-diagonal additive bias: tokens only attend within their own image
    row = jnp.arange(BS) // SEQ
    attn_bias = jnp.where(row[:, None] == row[None, :], 0.0, -1e9).astype(f32)

    def ws(k, shape, scale=0.02):
        return scale * jax.random.normal(k, (DEPTH,) + shape, dtype=f32)

    bk = jax.random.split(ks[5], 12)
    params = {
        "pe_w": pe_w.astype(bf16),
        "stem_bias": stem_bias,
        "prefix": prefix,
        "attn_bias": attn_bias,
        "n1_g": jnp.ones((DEPTH, 1, D), f32), "n1_b": jnp.zeros((DEPTH, 1, D), f32),
        "q_w": (ws(bk[0], (NH, D, DH)) * ATTN_SCALE).astype(bf16),   # scale folded
        "q_b": ws(bk[1], (NH, 1, DH)) * ATTN_SCALE,
        "k_w": ws(bk[2], (NH, D, DH)).astype(bf16),
        "k_b": ws(bk[3], (NH, 1, DH)),
        "v_w": ws(bk[4], (NH, D, DH)).astype(bf16),
        "v_b": ws(bk[5], (NH, 1, DH)),
        "proj_w": ws(bk[6], (NH, DH, D)).astype(bf16),               # head-major merge
        "proj_b": ws(bk[7], (1, D)),
        "ls1": jnp.full((DEPTH, 1, D), 1e-5, f32),
        "n2_g": jnp.ones((DEPTH, 1, D), f32), "n2_b": jnp.zeros((DEPTH, 1, D), f32),
        "fc1_w": ws(bk[8], (D, MLP)).astype(bf16),
        "fc1_b": ws(bk[9], (1, MLP)),
        "fc2_w": ws(bk[10], (MLP, D)).astype(bf16),
        "fc2_b": ws(bk[11], (1, D)),
        "ls2": jnp.full((DEPTH, 1, D), 1e-5, f32),
        "norm_g": jnp.ones((1, D), f32), "norm_b": jnp.zeros((1, D), f32),
        "head_w": w(ks[6], (D, NUM_CLASSES)).astype(bf16),
        "head_b": w(ks[7], (1, NUM_CLASSES)),
    }
    return params


# --------------------------------- forward ----------------------------------
def forward(x_nchw, params):
    Bn, Cn, H, W = x_nchw.shape
    nP = (H // PATCH) * (W // PATCH)
    # patchify: Conv2d(C, D, k=p, s=p) expressed as patch extraction (XLA layout plumbing)
    patches = x_nchw.reshape(Bn, Cn, H // PATCH, PATCH, W // PATCH, PATCH)
    patches = patches.transpose(0, 2, 4, 1, 3, 5).reshape(Bn * nP, Cn * PATCH * PATCH)
    # single fused pallas_call: stem + DEPTH transformer blocks + norm/CLS/classifier
    return dinov2_pallas(patches.astype(jnp.bfloat16), params)   # (B, NUM_CLASSES)


# ----------------------------------- main ------------------------------------
if __name__ == "__main__":
    key = jax.random.PRNGKey(0)
    pkey, xkey = jax.random.split(key)
    params = init_params(pkey)
    x = jax.random.normal(xkey, (B, C, IMG, IMG), dtype=jnp.float32)

    fwd = jax.jit(forward)
    out = jax.block_until_ready(fwd(x, params))
    assert out.shape == (B, NUM_CLASSES), out.shape
    assert bool(jnp.all(jnp.isfinite(out)))
    print("KERNEL_OK")
</pallas_src>

<mosaic_0001>
module attributes {stable_mosaic.version = 11 : i64} {
  func.func @_model_kernel(%arg0: i32, %arg1: memref<32x48xbf16, #tpu.memory_space<vmem>>, %arg2: memref<48x32xbf16, #tpu.memory_space<vmem>>, %arg3: memref<32x32xf32, #tpu.memory_space<vmem>>, %arg4: memref<5x32xf32, #tpu.memory_space<vmem>>, %arg5: memref<42x42xf32, #tpu.memory_space<vmem>>, %arg6: memref<1x1x32xf32, #tpu.memory_space<vmem>>, %arg7: memref<1x1x32xf32, #tpu.memory_space<vmem>>, %arg8: memref<1x2x32x16xbf16, #tpu.memory_space<vmem>>, %arg9: memref<1x2x1x16xf32, #tpu.memory_space<vmem>>, %arg10: memref<1x2x32x16xbf16, #tpu.memory_space<vmem>>, %arg11: memref<1x2x1x16xf32, #tpu.memory_space<vmem>>, %arg12: memref<1x2x32x16xbf16, #tpu.memory_space<vmem>>, %arg13: memref<1x2x1x16xf32, #tpu.memory_space<vmem>>, %arg14: memref<1x2x16x32xbf16, #tpu.memory_space<vmem>>, %arg15: memref<1x1x32xf32, #tpu.memory_space<vmem>>, %arg16: memref<1x1x32xf32, #tpu.memory_space<vmem>>, %arg17: memref<1x1x32xf32, #tpu.memory_space<vmem>>, %arg18: memref<1x1x32xf32, #tpu.memory_space<vmem>>, %arg19: memref<1x32x128xbf16, #tpu.memory_space<vmem>>, %arg20: memref<1x1x128xf32, #tpu.memory_space<vmem>>, %arg21: memref<1x128x32xbf16, #tpu.memory_space<vmem>>, %arg22: memref<1x1x32xf32, #tpu.memory_space<vmem>>, %arg23: memref<1x1x32xf32, #tpu.memory_space<vmem>>, %arg24: memref<1x32xf32, #tpu.memory_space<vmem>>, %arg25: memref<1x32xf32, #tpu.memory_space<vmem>>, %arg26: memref<32x5xbf16, #tpu.memory_space<vmem>>, %arg27: memref<1x5xf32, #tpu.memory_space<vmem>>, %arg28: memref<2x5xf32, #tpu.memory_space<vmem>>, %arg29: memref<42x32xf32, #tpu.memory_space<vmem>>) attributes {dimension_semantics = [#tpu.dimension_semantics<arbitrary>], iteration_bounds = array<i64: 2>, scalar_prefetch = 0 : i64, scratch_operands = 1 : i64, tpu.core_type = #tpu.core_type<tc>, window_params = [{pipeline_mode = #tpu.pipeline_mode<synchronous>, transform_indices = @transform_0, window_bounds = array<i64: 32, 48>}, {pipeline_mode = #tpu.pipeline_mode<synchronous>, transform_indices = @transform_1, window_bounds = array<i64: 48, 32>}, {pipeline_mode = #tpu.pipeline_mode<synchronous>, transform_indices = @transform_2, window_bounds = array<i64: 32, 32>}, {pipeline_mode = #tpu.pipeline_mode<synchronous>, transform_indices = @transform_3, window_bounds = array<i64: 5, 32>}, {pipeline_mode = #tpu.pipeline_mode<synchronous>, transform_indices = @transform_4, window_bounds = array<i64: 42, 42>}, {transform_indices = @transform_5, window_bounds = array<i64: 1, 1, 32>}, {transform_indices = @transform_6, window_bounds = array<i64: 1, 1, 32>}, {transform_indices = @transform_7, window_bounds = array<i64: 1, 2, 32, 16>}, {transform_indices = @transform_8, window_bounds = array<i64: 1, 2, 1, 16>}, {transform_indices = @transform_9, window_bounds = array<i64: 1, 2, 32, 16>}, {transform_indices = @transform_10, window_bounds = array<i64: 1, 2, 1, 16>}, {transform_indices = @transform_11, window_bounds = array<i64: 1, 2, 32, 16>}, {transform_indices = @transform_12, window_bounds = array<i64: 1, 2, 1, 16>}, {transform_indices = @transform_13, window_bounds = array<i64: 1, 2, 16, 32>}, {transform_indices = @transform_14, window_bounds = array<i64: 1, 1, 32>}, {transform_indices = @transform_15, window_bounds = array<i64: 1, 1, 32>}, {transform_indices = @transform_16, window_bounds = array<i64: 1, 1, 32>}, {transform_indices = @transform_17, window_bounds = array<i64: 1, 1, 32>}, {transform_indices = @transform_18, window_bounds = array<i64: 1, 32, 128>}, {transform_indices = @transform_19, window_bounds = array<i64: 1, 1, 128>}, {transform_indices = @transform_20, window_bounds = array<i64: 1, 128, 32>}, {transform_indices = @transform_21, window_bounds = array<i64: 1, 1, 32>}, {transform_indices = @transform_22, window_bounds = array<i64: 1, 1, 32>}, {pipeline_mode = #tpu.pipeline_mode<synchronous>, transform_indices = @transform_23, window_bounds = array<i64: 1, 32>}, {pipeline_mode = #tpu.pipeline_mode<synchronous>, transform_indices = @transform_24, window_bounds = array<i64: 1, 32>}, {pipeline_mode = #tpu.pipeline_mode<synchronous>, transform_indices = @transform_25, window_bounds = array<i64: 32, 5>}, {pipeline_mode = #tpu.pipeline_mode<synchronous>, transform_indices = @transform_26, window_bounds = array<i64: 1, 5>}, {pipeline_mode = #tpu.pipeline_mode<synchronous>, transform_indices = @transform_27, window_bounds = array<i64: 2, 5>}]} {
    %c0_i32 = arith.constant 0 : i32
    %0 = arith.cmpi eq, %arg0, %c0_i32 : i32
    %1 = arith.extui %0 : i1 to i32
    %c0_i32_0 = arith.constant 0 : i32
    %2 = arith.cmpi ne, %1, %c0_i32_0 : i32
    scf.if %2 {
      %c0_128 = arith.constant 0 : index
      %c0_129 = arith.constant 0 : index
      %184 = vector.load %arg1[%c0_128, %c0_129] : memref<32x48xbf16, #tpu.memory_space<vmem>>, vector<32x48xbf16>
      %c0_130 = arith.constant 0 : index
      %c0_131 = arith.constant 0 : index
      %185 = vector.load %arg2[%c0_130, %c0_131] : memref<48x32xbf16, #tpu.memory_space<vmem>>, vector<48x32xbf16>
      %cst_132 = arith.constant dense<0.000000e+00> : vector<32x32xf32>
      %186 = tpu.matmul %184, %185, %cst_132 {dimension_numbers = #tpu.dot_dimension_numbers<[1], [0], [0], [1], [0, 0, 1, 1], [], []>} : vector<32x48xbf16>, vector<48x32xbf16>, vector<32x32xf32> -> vector<32x32xf32>
      %c0_133 = arith.constant 0 : index
      %c0_134 = arith.constant 0 : index
      %187 = vector.load %arg3[%c0_133, %c0_134] : memref<32x32xf32, #tpu.memory_space<vmem>>, vector<32x32xf32>
      %188 = arith.addf %186, %187 : vector<32x32xf32>
      %c0_135 = arith.constant 0 : index
      %c0_136 = arith.constant 0 : index
      %189 = vector.load %arg4[%c0_135, %c0_136] : memref<5x32xf32, #tpu.memory_space<vmem>>, vector<5x32xf32>
      %c0_137 = arith.constant 0 : index
      %c0_138 = arith.constant 0 : index
      %190 = vector.load %arg29[%c0_137, %c0_138] : memref<42x32xf32, #tpu.memory_space<vmem>>, vector<5x32xf32>
      tpu.vector_store %arg29[%c0_137, %c0_138], %189 {strides = array<i32>} : memref<42x32xf32, #tpu.memory_space<vmem>>, vector<5x32xf32>,
      %191 = vector.extract_strided_slice %188 {offsets = [0, 0], sizes = [16, 32], strides = [1, 1]} : vector<32x32xf32> to vector<16x32xf32>
      %c5 = arith.constant 5 : index
      %c0_139 = arith.constant 0 : index
      %192 = vector.load %arg29[%c5, %c0_139] : memref<42x32xf32, #tpu.memory_space<vmem>>, vector<16x32xf32>
      tpu.vector_store %arg29[%c5, %c0_139], %191 {strides = array<i32>} : memref<42x32xf32, #tpu.memory_space<vmem>>, vector<16x32xf32>,
      %c0_140 = arith.constant 0 : index
      %c0_141 = arith.constant 0 : index
      %193 = vector.load %arg4[%c0_140, %c0_141] : memref<5x32xf32, #tpu.memory_space<vmem>>, vector<5x32xf32>
      %c21 = arith.constant 21 : index
      %c0_142 = arith.constant 0 : index
      %194 = vector.load %arg29[%c21, %c0_142] : memref<42x32xf32, #tpu.memory_space<vmem>>, vector<5x32xf32>
      tpu.vector_store %arg29[%c21, %c0_142], %193 {strides = array<i32>} : memref<42x32xf32, #tpu.memory_space<vmem>>, vector<5x32xf32>,
      %195 = vector.extract_strided_slice %188 {offsets = [16, 0], sizes = [16, 32], strides = [1, 1]} : vector<32x32xf32> to vector<16x32xf32>
      %c26 = arith.constant 26 : index
      %c0_143 = arith.constant 0 : index
      %196 = vector.load %arg29[%c26, %c0_143] : memref<42x32xf32, #tpu.memory_space<vmem>>, vector<16x32xf32>
      tpu.vector_store %arg29[%c26, %c0_143], %195 {strides = array<i32>} : memref<42x32xf32, #tpu.memory_space<vmem>>, vector<16x32xf32>,
    } else {
    }
    %c0 = arith.constant 0 : index
    %c0_1 = arith.constant 0 : index
    %3 = vector.load %arg29[%c0, %c0_1] : memref<42x32xf32, #tpu.memory_space<vmem>>, vector<42x32xf32>
    %c0_2 = arith.constant 0 : index
    %c0_3 = arith.constant 0 : index
    %c0_4 = arith.constant 0 : index
    %4 = vector.load %arg6[%c0_2, %c0_3, %c0_4] : memref<1x1x32xf32, #tpu.memory_space<vmem>>, vector<1x1x32xf32>
    %5 = vector.shape_cast %4 : vector<1x1x32xf32> to vector<1x32xf32>
    %c0_5 = arith.constant 0 : index
    %c0_6 = arith.constant 0 : index
    %c0_7 = arith.constant 0 : index
    %6 = vector.load %arg7[%c0_5, %c0_6, %c0_7] : memref<1x1x32xf32, #tpu.memory_space<vmem>>, vector<1x1x32xf32>
    %7 = vector.shape_cast %6 : vector<1x1x32xf32> to vector<1x32xf32>
    %cst = arith.constant dense<0.000000e+00> : vector<42xf32>
    %8 = vector.multi_reduction <add>, %3, %cst [1] : vector<42x32xf32> to vector<42xf32>
    %9 = vector.shape_cast %8 : vector<42xf32> to vector<42x1xf32>
    %cst_8 = arith.constant 3.200000e+01 : f32
    %10 = vector.broadcast %cst_8 : f32 to vector<42x1xf32>
    %11 = arith.divf %9, %10 : vector<42x1xf32>
    %12 = vector.broadcast %11 : vector<42x1xf32> to vector<42x32xf32>
    %13 = arith.subf %3, %12 : vector<42x32xf32>
    %14 = arith.mulf %13, %13 : vector<42x32xf32>
    %cst_9 = arith.constant dense<0.000000e+00> : vector<42xf32>
    %15 = vector.multi_reduction <add>, %14, %cst_9 [1] : vector<42x32xf32> to vector<42xf32>
    %16 = vector.shape_cast %15 : vector<42xf32> to vector<42x1xf32>
    %cst_10 = arith.constant 3.200000e+01 : f32
    %17 = vector.broadcast %cst_10 : f32 to vector<42x1xf32>
    %18 = arith.divf %16, %17 : vector<42x1xf32>
    %cst_11 = arith.constant 9.99999997E-7 : f32
    %19 = vector.broadcast %cst_11 : f32 to vector<42x1xf32>
    %20 = arith.addf %18, %19 : vector<42x1xf32>
    %21 = math.rsqrt %20 : vector<42x1xf32>
    %22 = vector.broadcast %21 : vector<42x1xf32> to vector<42x32xf32>
    %23 = arith.mulf %13, %22 : vector<42x32xf32>
    %24 = vector.broadcast %5 : vector<1x32xf32> to vector<42x32xf32>
    %25 = arith.mulf %23, %24 : vector<42x32xf32>
    %26 = vector.broadcast %7 : vector<1x32xf32> to vector<42x32xf32>
    %27 = arith.addf %25, %26 : vector<42x32xf32>
    %28 = arith.truncf %27 : vector<42x32xf32> to vector<42x32xbf16>
    %cst_12 = arith.constant 0.000000e+00 : f32
    %29 = vector.broadcast %cst_12 : f32 to vector<42x32xf32>
    %c0_13 = arith.constant 0 : index
    %c0_14 = arith.constant 0 : index
    %c0_15 = arith.constant 0 : index
    %c0_16 = arith.constant 0 : index
    %30 = vector.load %arg8[%c0_13, %c0_14, %c0_15, %c0_16] : memref<1x2x32x16xbf16, #tpu.memory_space<vmem>>, vector<1x1x32x16xbf16>
    %31 = vector.shape_cast %30 : vector<1x1x32x16xbf16> to vector<32x16xbf16>
    %cst_17 = arith.constant dense<0.000000e+00> : vector<42x16xf32>
    %32 = tpu.matmul %28, %31, %cst_17 {dimension_numbers = #tpu.dot_dimension_numbers<[1], [0], [0], [1], [0, 0, 1, 1], [], []>} : vector<42x32xbf16>, vector<32x16xbf16>, vector<42x16xf32> -> vector<42x16xf32>
    %c0_18 = arith.constant 0 : index
    %c0_19 = arith.constant 0 : index
    %c0_20 = arith.constant 0 : index
    %c0_21 = arith.constant 0 : index
    %33 = vector.load %arg9[%c0_18, %c0_19, %c0_20, %c0_21] : memref<1x2x1x16xf32, #tpu.memory_space<vmem>>, vector<1x1x1x16xf32>
    %34 = vector.shape_cast %33 : vector<1x1x1x16xf32> to vector<1x16xf32>
    %35 = vector.broadcast %34 : vector<1x16xf32> to vector<42x16xf32>
    %36 = arith.addf %32, %35 : vector<42x16xf32>
    %c0_22 = arith.constant 0 : index
    %c0_23 = arith.constant 0 : index
    %c0_24 = arith.constant 0 : index
    %c0_25 = arith.constant 0 : index
    %37 = vector.load %arg10[%c0_22, %c0_23, %c0_24, %c0_25] : memref<1x2x32x16xbf16, #tpu.memory_space<vmem>>, vector<1x1x32x16xbf16>
    %38 = vector.shape_cast %37 : vector<1x1x32x16xbf16> to vector<32x16xbf16>
    %cst_26 = arith.constant dense<0.000000e+00> : vector<42x16xf32>
    %39 = tpu.matmul %28, %38, %cst_26 {dimension_numbers = #tpu.dot_dimension_numbers<[1], [0], [0], [1], [0, 0, 1, 1], [], []>} : vector<42x32xbf16>, vector<32x16xbf16>, vector<42x16xf32> -> vector<42x16xf32>
    %c0_27 = arith.constant 0 : index
    %c0_28 = arith.constant 0 : index
    %c0_29 = arith.constant 0 : index
    %c0_30 = arith.constant 0 : index
    %40 = vector.load %arg11[%c0_27, %c0_28, %c0_29, %c0_30] : memref<1x2x1x16xf32, #tpu.memory_space<vmem>>, vector<1x1x1x16xf32>
    %41 = vector.shape_cast %40 : vector<1x1x1x16xf32> to vector<1x16xf32>
    %42 = vector.broadcast %41 : vector<1x16xf32> to vector<42x16xf32>
    %43 = arith.addf %39, %42 : vector<42x16xf32>
    %c0_31 = arith.constant 0 : index
    %c0_32 = arith.constant 0 : index
    %c0_33 = arith.constant 0 : index
    %c0_34 = arith.constant 0 : index
    %44 = vector.load %arg12[%c0_31, %c0_32, %c0_33, %c0_34] : memref<1x2x32x16xbf16, #tpu.memory_space<vmem>>, vector<1x1x32x16xbf16>
    %45 = vector.shape_cast %44 : vector<1x1x32x16xbf16> to vector<32x16xbf16>
    %cst_35 = arith.constant dense<0.000000e+00> : vector<42x16xf32>
    %46 = tpu.matmul %28, %45, %cst_35 {dimension_numbers = #tpu.dot_dimension_numbers<[1], [0], [0], [1], [0, 0, 1, 1], [], []>} : vector<42x32xbf16>, vector<32x16xbf16>, vector<42x16xf32> -> vector<42x16xf32>
    %c0_36 = arith.constant 0 : index
    %c0_37 = arith.constant 0 : index
    %c0_38 = arith.constant 0 : index
    %c0_39 = arith.constant 0 : index
    %47 = vector.load %arg13[%c0_36, %c0_37, %c0_38, %c0_39] : memref<1x2x1x16xf32, #tpu.memory_space<vmem>>, vector<1x1x1x16xf32>
    %48 = vector.shape_cast %47 : vector<1x1x1x16xf32> to vector<1x16xf32>
    %49 = vector.broadcast %48 : vector<1x16xf32> to vector<42x16xf32>
    %50 = arith.addf %46, %49 : vector<42x16xf32>
    %51 = arith.truncf %36 : vector<42x16xf32> to vector<42x16xbf16>
    %52 = arith.truncf %43 : vector<42x16xf32> to vector<42x16xbf16>
    %cst_40 = arith.constant dense<0.000000e+00> : vector<42x42xf32>
    %53 = tpu.matmul %51, %52, %cst_40 {dimension_numbers = #tpu.dot_dimension_numbers<[1], [1], [0], [0], [0, 0, 1, 0], [], []>} : vector<42x16xbf16>, vector<42x16xbf16>, vector<42x42xf32> -> vector<42x42xf32>
    %c0_41 = arith.constant 0 : index
    %c0_42 = arith.constant 0 : index
    %54 = vector.load %arg5[%c0_41, %c0_42] : memref<42x42xf32, #tpu.memory_space<vmem>>, vector<42x42xf32>
    %55 = arith.addf %53, %54 : vector<42x42xf32>
    %cst_43 = arith.constant dense<0xFF800000> : vector<42xf32>
    %56 = vector.multi_reduction <maximumf>, %55, %cst_43 [1] : vector<42x42xf32> to vector<42xf32>
    %57 = vector.shape_cast %56 : vector<42xf32> to vector<42x1xf32>
    %58 = vector.broadcast %57 : vector<42x1xf32> to vector<42x42xf32>
    %59 = arith.subf %55, %58 : vector<42x42xf32>
    %60 = math.exp %59 : vector<42x42xf32>
    %cst_44 = arith.constant dense<0.000000e+00> : vector<42xf32>
    %61 = vector.multi_reduction <add>, %60, %cst_44 [1] : vector<42x42xf32> to vector<42xf32>
    %62 = vector.shape_cast %61 : vector<42xf32> to vector<42x1xf32>
    %63 = tpu.reciprocal %62 {approx = true} : vector<42x1xf32> -> vector<42x1xf32>
    %64 = vector.broadcast %63 : vector<42x1xf32> to vector<42x42xf32>
    %65 = arith.mulf %60, %64 : vector<42x42xf32>
    %66 = arith.truncf %65 : vector<42x42xf32> to vector<42x42xbf16>
    %67 = arith.truncf %50 : vector<42x16xf32> to vector<42x16xbf16>
    %cst_45 = arith.constant dense<0.000000e+00> : vector<42x16xf32>
    %68 = tpu.matmul %66, %67, %cst_45 {dimension_numbers = #tpu.dot_dimension_numbers<[1], [0], [0], [1], [0, 0, 1, 1], [], []>} : vector<42x42xbf16>, vector<42x16xbf16>, vector<42x16xf32> -> vector<42x16xf32>
    %69 = arith.truncf %68 : vector<42x16xf32> to vector<42x16xbf16>
    %c0_46 = arith.constant 0 : index
    %c0_47 = arith.constant 0 : index
    %c0_48 = arith.constant 0 : index
    %c0_49 = arith.constant 0 : index
    %70 = vector.load %arg14[%c0_46, %c0_47, %c0_48, %c0_49] : memref<1x2x16x32xbf16, #tpu.memory_space<vmem>>, vector<1x1x16x32xbf16>
    %71 = vector.shape_cast %70 : vector<1x1x16x32xbf16> to vector<16x32xbf16>
    %cst_50 = arith.constant dense<0.000000e+00> : vector<42x32xf32>
    %72 = tpu.matmul %69, %71, %cst_50 {dimension_numbers = #tpu.dot_dimension_numbers<[1], [0], [0], [1], [0, 0, 1, 1], [], []>} : vector<42x16xbf16>, vector<16x32xbf16>, vector<42x32xf32> -> vector<42x32xf32>
    %73 = arith.addf %29, %72 : vector<42x32xf32>
    %c0_51 = arith.constant 0 : index
    %c1 = arith.constant 1 : index
    %c0_52 = arith.constant 0 : index
    %c0_53 = arith.constant 0 : index
    %74 = vector.load %arg8[%c0_51, %c1, %c0_52, %c0_53] : memref<1x2x32x16xbf16, #tpu.memory_space<vmem>>, vector<1x1x32x16xbf16>
    %75 = vector.shape_cast %74 : vector<1x1x32x16xbf16> to vector<32x16xbf16>
    %cst_54 = arith.constant dense<0.000000e+00> : vector<42x16xf32>
    %76 = tpu.matmul %28, %75, %cst_54 {dimension_numbers = #tpu.dot_dimension_numbers<[1], [0], [0], [1], [0, 0, 1, 1], [], []>} : vector<42x32xbf16>, vector<32x16xbf16>, vector<42x16xf32> -> vector<42x16xf32>
    %c0_55 = arith.constant 0 : index
    %c1_56 = arith.constant 1 : index
    %c0_57 = arith.constant 0 : index
    %c0_58 = arith.constant 0 : index
    %77 = vector.load %arg9[%c0_55, %c1_56, %c0_57, %c0_58] : memref<1x2x1x16xf32, #tpu.memory_space<vmem>>, vector<1x1x1x16xf32>
    %78 = vector.shape_cast %77 : vector<1x1x1x16xf32> to vector<1x16xf32>
    %79 = vector.broadcast %78 : vector<1x16xf32> to vector<42x16xf32>
    %80 = arith.addf %76, %79 : vector<42x16xf32>
    %c0_59 = arith.constant 0 : index
    %c1_60 = arith.constant 1 : index
    %c0_61 = arith.constant 0 : index
    %c0_62 = arith.constant 0 : index
    %81 = vector.load %arg10[%c0_59, %c1_60, %c0_61, %c0_62] : memref<1x2x32x16xbf16, #tpu.memory_space<vmem>>, vector<1x1x32x16xbf16>
    %82 = vector.shape_cast %81 : vector<1x1x32x16xbf16> to vector<32x16xbf16>
    %cst_63 = arith.constant dense<0.000000e+00> : vector<42x16xf32>
    %83 = tpu.matmul %28, %82, %cst_63 {dimension_numbers = #tpu.dot_dimension_numbers<[1], [0], [0], [1], [0, 0, 1, 1], [], []>} : vector<42x32xbf16>, vector<32x16xbf16>, vector<42x16xf32> -> vector<42x16xf32>
    %c0_64 = arith.constant 0 : index
    %c1_65 = arith.constant 1 : index
    %c0_66 = arith.constant 0 : index
    %c0_67 = arith.constant 0 : index
    %84 = vector.load %arg11[%c0_64, %c1_65, %c0_66, %c0_67] : memref<1x2x1x16xf32, #tpu.memory_space<vmem>>, vector<1x1x1x16xf32>
    %85 = vector.shape_cast %84 : vector<1x1x1x16xf32> to vector<1x16xf32>
    %86 = vector.broadcast %85 : vector<1x16xf32> to vector<42x16xf32>
    %87 = arith.addf %83, %86 : vector<42x16xf32>
    %c0_68 = arith.constant 0 : index
    %c1_69 = arith.constant 1 : index
    %c0_70 = arith.constant 0 : index
    %c0_71 = arith.constant 0 : index
    %88 = vector.load %arg12[%c0_68, %c1_69, %c0_70, %c0_71] : memref<1x2x32x16xbf16, #tpu.memory_space<vmem>>, vector<1x1x32x16xbf16>
    %89 = vector.shape_cast %88 : vector<1x1x32x16xbf16> to vector<32x16xbf16>
    %cst_72 = arith.constant dense<0.000000e+00> : vector<42x16xf32>
    %90 = tpu.matmul %28, %89, %cst_72 {dimension_numbers = #tpu.dot_dimension_numbers<[1], [0], [0], [1], [0, 0, 1, 1], [], []>} : vector<42x32xbf16>, vector<32x16xbf16>, vector<42x16xf32> -> vector<42x16xf32>
    %c0_73 = arith.constant 0 : index
    %c1_74 = arith.constant 1 : index
    %c0_75 = arith.constant 0 : index
    %c0_76 = arith.constant 0 : index
    %91 = vector.load %arg13[%c0_73, %c1_74, %c0_75, %c0_76] : memref<1x2x1x16xf32, #tpu.memory_space<vmem>>, vector<1x1x1x16xf32>
    %92 = vector.shape_cast %91 : vector<1x1x1x16xf32> to vector<1x16xf32>
    %93 = vector.broadcast %92 : vector<1x16xf32> to vector<42x16xf32>
    %94 = arith.addf %90, %93 : vector<42x16xf32>
    %95 = arith.truncf %80 : vector<42x16xf32> to vector<42x16xbf16>
    %96 = arith.truncf %87 : vector<42x16xf32> to vector<42x16xbf16>
    %cst_77 = arith.constant dense<0.000000e+00> : vector<42x42xf32>
    %97 = tpu.matmul %95, %96, %cst_77 {dimension_numbers = #tpu.dot_dimension_numbers<[1], [1], [0], [0], [0, 0, 1, 0], [], []>} : vector<42x16xbf16>, vector<42x16xbf16>, vector<42x42xf32> -> vector<42x42xf32>
    %c0_78 = arith.constant 0 : index
    %c0_79 = arith.constant 0 : index
    %98 = vector.load %arg5[%c0_78, %c0_79] : memref<42x42xf32, #tpu.memory_space<vmem>>, vector<42x42xf32>
    %99 = arith.addf %97, %98 : vector<42x42xf32>
    %cst_80 = arith.constant dense<0xFF800000> : vector<42xf32>
    %100 = vector.multi_reduction <maximumf>, %99, %cst_80 [1] : vector<42x42xf32> to vector<42xf32>
    %101 = vector.shape_cast %100 : vector<42xf32> to vector<42x1xf32>
    %102 = vector.broadcast %101 : vector<42x1xf32> to vector<42x42xf32>
    %103 = arith.subf %99, %102 : vector<42x42xf32>
    %104 = math.exp %103 : vector<42x42xf32>
    %cst_81 = arith.constant dense<0.000000e+00> : vector<42xf32>
    %105 = vector.multi_reduction <add>, %104, %cst_81 [1] : vector<42x42xf32> to vector<42xf32>
    %106 = vector.shape_cast %105 : vector<42xf32> to vector<42x1xf32>
    %107 = tpu.reciprocal %106 {approx = true} : vector<42x1xf32> -> vector<42x1xf32>
    %108 = vector.broadcast %107 : vector<42x1xf32> to vector<42x42xf32>
    %109 = arith.mulf %104, %108 : vector<42x42xf32>
    %110 = arith.truncf %109 : vector<42x42xf32> to vector<42x42xbf16>
    %111 = arith.truncf %94 : vector<42x16xf32> to vector<42x16xbf16>
    %cst_82 = arith.constant dense<0.000000e+00> : vector<42x16xf32>
    %112 = tpu.matmul %110, %111, %cst_82 {dimension_numbers = #tpu.dot_dimension_numbers<[1], [0], [0], [1], [0, 0, 1, 1], [], []>} : vector<42x42xbf16>, vector<42x16xbf16>, vector<42x16xf32> -> vector<42x16xf32>
    %113 = arith.truncf %112 : vector<42x16xf32> to vector<42x16xbf16>
    %c0_83 = arith.constant 0 : index
    %c1_84 = arith.constant 1 : index
    %c0_85 = arith.constant 0 : index
    %c0_86 = arith.constant 0 : index
    %114 = vector.load %arg14[%c0_83, %c1_84, %c0_85, %c0_86] : memref<1x2x16x32xbf16, #tpu.memory_space<vmem>>, vector<1x1x16x32xbf16>
    %115 = vector.shape_cast %114 : vector<1x1x16x32xbf16> to vector<16x32xbf16>
    %cst_87 = arith.constant dense<0.000000e+00> : vector<42x32xf32>
    %116 = tpu.matmul %113, %115, %cst_87 {dimension_numbers = #tpu.dot_dimension_numbers<[1], [0], [0], [1], [0, 0, 1, 1], [], []>} : vector<42x16xbf16>, vector<16x32xbf16>, vector<42x32xf32> -> vector<42x32xf32>
    %117 = arith.addf %73, %116 : vector<42x32xf32>
    %c0_88 = arith.constant 0 : index
    %c0_89 = arith.constant 0 : index
    %c0_90 = arith.constant 0 : index
    %118 = vector.load %arg15[%c0_88, %c0_89, %c0_90] : memref<1x1x32xf32, #tpu.memory_space<vmem>>, vector<1x1x32xf32>
    %119 = vector.shape_cast %118 : vector<1x1x32xf32> to vector<1x32xf32>
    %120 = vector.broadcast %119 : vector<1x32xf32> to vector<42x32xf32>
    %121 = arith.addf %117, %120 : vector<42x32xf32>
    %c0_91 = arith.constant 0 : index
    %c0_92 = arith.constant 0 : index
    %c0_93 = arith.constant 0 : index
    %122 = vector.load %arg16[%c0_91, %c0_92, %c0_93] : memref<1x1x32xf32, #tpu.memory_space<vmem>>, vector<1x1x32xf32>
    %123 = vector.shape_cast %122 : vector<1x1x32xf32> to vector<1x32xf32>
    %124 = vector.broadcast %123 : vector<1x32xf32> to vector<42x32xf32>
    %125 = arith.mulf %121, %124 : vector<42x32xf32>
    %126 = arith.addf %3, %125 : vector<42x32xf32>
    %c0_94 = arith.constant 0 : index
    %c0_95 = arith.constant 0 : index
    %c0_96 = arith.constant 0 : index
    %127 = vector.load %arg17[%c0_94, %c0_95, %c0_96] : memref<1x1x32xf32, #tpu.memory_space<vmem>>, vector<1x1x32xf32>
    %128 = vector.shape_cast %127 : vector<1x1x32xf32> to vector<1x32xf32>
    %c0_97 = arith.constant 0 : index
    %c0_98 = arith.constant 0 : index
    %c0_99 = arith.constant 0 : index
    %129 = vector.load %arg18[%c0_97, %c0_98, %c0_99] : memref<1x1x32xf32, #tpu.memory_space<vmem>>, vector<1x1x32xf32>
    %130 = vector.shape_cast %129 : vector<1x1x32xf32> to vector<1x32xf32>
    %cst_100 = arith.constant dense<0.000000e+00> : vector<42xf32>
    %131 = vector.multi_reduction <add>, %126, %cst_100 [1] : vector<42x32xf32> to vector<42xf32>
    %132 = vector.shape_cast %131 : vector<42xf32> to vector<42x1xf32>
    %cst_101 = arith.constant 3.200000e+01 : f32
    %133 = vector.broadcast %cst_101 : f32 to vector<42x1xf32>
    %134 = arith.divf %132, %133 : vector<42x1xf32>
    %135 = vector.broadcast %134 : vector<42x1xf32> to vector<42x32xf32>
    %136 = arith.subf %126, %135 : vector<42x32xf32>
    %137 = arith.mulf %136, %136 : vector<42x32xf32>
    %cst_102 = arith.constant dense<0.000000e+00> : vector<42xf32>
    %138 = vector.multi_reduction <add>, %137, %cst_102 [1] : vector<42x32xf32> to vector<42xf32>
    %139 = vector.shape_cast %138 : vector<42xf32> to vector<42x1xf32>
    %cst_103 = arith.constant 3.200000e+01 : f32
    %140 = vector.broadcast %cst_103 : f32 to vector<42x1xf32>
    %141 = arith.divf %139, %140 : vector<42x1xf32>
    %cst_104 = arith.constant 9.99999997E-7 : f32
    %142 = vector.broadcast %cst_104 : f32 to vector<42x1xf32>
    %143 = arith.addf %141, %142 : vector<42x1xf32>
    %144 = math.rsqrt %143 : vector<42x1xf32>
    %145 = vector.broadcast %144 : vector<42x1xf32> to vector<42x32xf32>
    %146 = arith.mulf %136, %145 : vector<42x32xf32>
    %147 = vector.broadcast %128 : vector<1x32xf32> to vector<42x32xf32>
    %148 = arith.mulf %146, %147 : vector<42x32xf32>
    %149 = vector.broadcast %130 : vector<1x32xf32> to vector<42x32xf32>
    %150 = arith.addf %148, %149 : vector<42x32xf32>
    %151 = arith.truncf %150 : vector<42x32xf32> to vector<42x32xbf16>
    %c0_105 = arith.constant 0 : index
    %c0_106 = arith.constant 0 : index
    %c0_107 = arith.constant 0 : index
    %152 = vector.load %arg19[%c0_105, %c0_106, %c0_107] : memref<1x32x128xbf16, #tpu.memory_space<vmem>>, vector<1x32x128xbf16>
    %153 = vector.shape_cast %152 : vector<1x32x128xbf16> to vector<32x128xbf16>
    %cst_108 = arith.constant dense<0.000000e+00> : vector<42x128xf32>
    %154 = tpu.matmul %151, %153, %cst_108 {dimension_numbers = #tpu.dot_dimension_numbers<[1], [0], [0], [1], [0, 0, 1, 1], [], []>} : vector<42x32xbf16>, vector<32x128xbf16>, vector<42x128xf32> -> vector<42x128xf32>
    %c0_109 = arith.constant 0 : index
    %c0_110 = arith.constant 0 : index
    %c0_111 = arith.constant 0 : index
    %155 = vector.load %arg20[%c0_109, %c0_110, %c0_111] : memref<1x1x128xf32, #tpu.memory_space<vmem>>, vector<1x1x128xf32>
    %156 = vector.shape_cast %155 : vector<1x1x128xf32> to vector<1x128xf32>
    %157 = vector.broadcast %156 : vector<1x128xf32> to vector<42x128xf32>
    %158 = arith.addf %154, %157 : vector<42x128xf32>
    %cst_112 = arith.constant 5.000000e-01 : f32
    %159 = vector.broadcast %cst_112 : f32 to vector<42x128xf32>
    %160 = arith.mulf %159, %158 : vector<42x128xf32>
    %cst_113 = arith.constant 0.707106769 : f32
    %161 = vector.broadcast %cst_113 : f32 to vector<42x128xf32>
    %162 = arith.mulf %158, %161 : vector<42x128xf32>
    %163 = math.erf %162 : vector<42x128xf32>
    %cst_114 = arith.constant 1.000000e+00 : f32
    %164 = vector.broadcast %cst_114 : f32 to vector<42x128xf32>
    %165 = arith.addf %164, %163 : vector<42x128xf32>
    %166 = arith.mulf %160, %165 : vector<42x128xf32>
    %167 = arith.truncf %166 : vector<42x128xf32> to vector<42x128xbf16>
    %c0_115 = arith.constant 0 : index
    %c0_116 = arith.constant 0 : index
    %c0_117 = arith.constant 0 : index
    %168 = vector.load %arg21[%c0_115, %c0_116, %c0_117] : memref<1x128x32xbf16, #tpu.memory_space<vmem>>, vector<1x128x32xbf16>
    %169 = vector.shape_cast %168 : vector<1x128x32xbf16> to vector<128x32xbf16>
    %cst_118 = arith.constant dense<0.000000e+00> : vector<42x32xf32>
    %170 = tpu.matmul %167, %169, %cst_118 {dimension_numbers = #tpu.dot_dimension_numbers<[1], [0], [0], [1], [0, 0, 1, 1], [], []>} : vector<42x128xbf16>, vector<128x32xbf16>, vector<42x32xf32> -> vector<42x32xf32>
    %c0_119 = arith.constant 0 : index
    %c0_120 = arith.constant 0 : index
    %c0_121 = arith.constant 0 : index
    %171 = vector.load %arg22[%c0_119, %c0_120, %c0_121] : memref<1x1x32xf32, #tpu.memory_space<vmem>>, vector<1x1x32xf32>
    %172 = vector.shape_cast %171 : vector<1x1x32xf32> to vector<1x32xf32>
    %173 = vector.broadcast %172 : vector<1x32xf32> to vector<42x32xf32>
    %174 = arith.addf %170, %173 : vector<42x32xf32>
    %c0_122 = arith.constant 0 : index
    %c0_123 = arith.constant 0 : index
    %c0_124 = arith.constant 0 : index
    %175 = vector.load %arg23[%c0_122, %c0_123, %c0_124] : memref<1x1x32xf32, #tpu.memory_space<vmem>>, vector<1x1x32xf32>
    %176 = vector.shape_cast %175 : vector<1x1x32xf32> to vector<1x32xf32>
    %177 = vector.broadcast %176 : vector<1x32xf32> to vector<42x32xf32>
    %178 = arith.mulf %174, %177 : vector<42x32xf32>
    %179 = arith.addf %126, %178 : vector<42x32xf32>
    %c0_125 = arith.constant 0 : index
    %c0_126 = arith.constant 0 : index
    %180 = vector.load %arg29[%c0_125, %c0_126] : memref<42x32xf32, #tpu.memory_space<vmem>>, vector<42x32xf32>
    tpu.vector_store %arg29[%c0_125, %c0_126], %179 {strides = array<i32>} : memref<42x32xf32, #tpu.memory_space<vmem>>, vector<42x32xf32>,
    %c1_i32 = arith.constant 1 : i32
    %181 = arith.cmpi eq, %arg0, %c1_i32 : i32
    %182 = arith.extui %181 : i1 to i32
    %c0_i32_127 = arith.constant 0 : i32
    %183 = arith.cmpi ne, %182, %c0_i32_127 : i32
    scf.if %183 {
      %184 = vector.extract_strided_slice %179 {offsets = [0, 0], sizes = [1, 32], strides = [1, 1]} : vector<42x32xf32> to vector<1x32xf32>
      %185 = vector.extract_strided_slice %179 {offsets = [21, 0], sizes = [1, 32], strides = [1, 1]} : vector<42x32xf32> to vector<1x32xf32>
      %186 = tpu.concatenate %184, %185 in 0 : vector<1x32xf32>, vector<1x32xf32> -> vector<2x32xf32>
      %c0_128 = arith.constant 0 : index
      %c0_129 = arith.constant 0 : index
      %187 = vector.load %arg24[%c0_128, %c0_129] : memref<1x32xf32, #tpu.memory_space<vmem>>, vector<1x32xf32>
      %c0_130 = arith.constant 0 : index
      %c0_131 = arith.constant 0 : index
      %188 = vector.load %arg25[%c0_130, %c0_131] : memref<1x32xf32, #tpu.memory_space<vmem>>, vector<1x32xf32>
      %cst_132 = arith.constant dense<0.000000e+00> : vector<2xf32>
      %189 = vector.multi_reduction <add>, %186, %cst_132 [1] : vector<2x32xf32> to vector<2xf32>
      %190 = vector.shape_cast %189 : vector<2xf32> to vector<2x1xf32>
      %cst_133 = arith.constant 3.200000e+01 : f32
      %191 = vector.broadcast %cst_133 : f32 to vector<2x1xf32>
      %192 = arith.divf %190, %191 : vector<2x1xf32>
      %193 = vector.broadcast %192 : vector<2x1xf32> to vector<2x32xf32>
      %194 = arith.subf %186, %193 : vector<2x32xf32>
      %195 = arith.mulf %194, %194 : vector<2x32xf32>
      %cst_134 = arith.constant dense<0.000000e+00> : vector<2xf32>
      %196 = vector.multi_reduction <add>, %195, %cst_134 [1] : vector<2x32xf32> to vector<2xf32>
      %197 = vector.shape_cast %196 : vector<2xf32> to vector<2x1xf32>
      %cst_135 = arith.constant 3.200000e+01 : f32
      %198 = vector.broadcast %cst_135 : f32 to vector<2x1xf32>
      %199 = arith.divf %197, %198 : vector<2x1xf32>
      %cst_136 = arith.constant 9.99999997E-7 : f32
      %200 = vector.broadcast %cst_136 : f32 to vector<2x1xf32>
      %201 = arith.addf %199, %200 : vector<2x1xf32>
      %202 = math.rsqrt %201 : vector<2x1xf32>
      %203 = vector.broadcast %202 : vector<2x1xf32> to vector<2x32xf32>
      %204 = arith.mulf %194, %203 : vector<2x32xf32>
      %205 = vector.broadcast %187 : vector<1x32xf32> to vector<2x32xf32>
      %206 = arith.mulf %204, %205 : vector<2x32xf32>
      %207 = vector.broadcast %188 : vector<1x32xf32> to vector<2x32xf32>
      %208 = arith.addf %206, %207 : vector<2x32xf32>
      %209 = arith.truncf %208 : vector<2x32xf32> to vector<2x32xbf16>
      %c0_137 = arith.constant 0 : index
      %c0_138 = arith.constant 0 : index
      %210 = vector.load %arg26[%c0_137, %c0_138] : memref<32x5xbf16, #tpu.memory_space<vmem>>, vector<32x5xbf16>
      %cst_139 = arith.constant dense<0.000000e+00> : vector<2x5xf32>
      %211 = tpu.matmul %209, %210, %cst_139 {dimension_numbers = #tpu.dot_dimension_numbers<[1], [0], [0], [1], [0, 0, 1, 1], [], []>} : vector<2x32xbf16>, vector<32x5xbf16>, vector<2x5xf32> -> vector<2x5xf32>
      %c0_140 = arith.constant 0 : index
      %c0_141 = arith.constant 0 : index
      %212 = vector.load %arg27[%c0_140, %c0_141] : memref<1x5xf32, #tpu.memory_space<vmem>>, vector<1x5xf32>
      %213 = vector.broadcast %212 : vector<1x5xf32> to vector<2x5xf32>
      %214 = arith.addf %211, %213 : vector<2x5xf32>
      %c0_142 = arith.constant 0 : index
      %c0_143 = arith.constant 0 : index
      %215 = vector.load %arg28[%c0_142, %c0_143] : memref<2x5xf32, #tpu.memory_space<vmem>>, vector<2x5xf32>
      tpu.vector_store %arg28[%c0_142, %c0_143], %214 {strides = array<i32>} : memref<2x5xf32, #tpu.memory_space<vmem>>, vector<2x5xf32>,
    } else {
    }
    return
  }
  func.func @transform_0(%arg0: i32) -> (i32, i32) {
    %c0_i32 = arith.constant 0 : i32
    %c0_i32_0 = arith.constant 0 : i32
    %c0_i32_1 = arith.constant 0 : i32
    return %c0_i32, %c0_i32_0 : i32, i32
  }
  func.func @transform_1(%arg0: i32) -> (i32, i32) {
    %c0_i32 = arith.constant 0 : i32
    %c0_i32_0 = arith.constant 0 : i32
    %c0_i32_1 = arith.constant 0 : i32
    return %c0_i32, %c0_i32_0 : i32, i32
  }
  func.func @transform_2(%arg0: i32) -> (i32, i32) {
    %c0_i32 = arith.constant 0 : i32
    %c0_i32_0 = arith.constant 0 : i32
    %c0_i32_1 = arith.constant 0 : i32
    return %c0_i32, %c0_i32_0 : i32, i32
  }
  func.func @transform_3(%arg0: i32) -> (i32, i32) {
    %c0_i32 = arith.constant 0 : i32
    %c0_i32_0 = arith.constant 0 : i32
    %c0_i32_1 = arith.constant 0 : i32
    return %c0_i32, %c0_i32_0 : i32, i32
  }
  func.func @transform_4(%arg0: i32) -> (i32, i32) {
    %c0_i32 = arith.constant 0 : i32
    %c0_i32_0 = arith.constant 0 : i32
    %c0_i32_1 = arith.constant 0 : i32
    return %c0_i32, %c0_i32_0 : i32, i32
  }
  func.func @transform_5(%arg0: i32) -> (i32, i32, i32) {
    %c0_i32 = arith.constant 0 : i32
    %c0_i32_0 = arith.constant 0 : i32
    %c0_i32_1 = arith.constant 0 : i32
    return %arg0, %c0_i32, %c0_i32_0 : i32, i32, i32
  }
  func.func @transform_6(%arg0: i32) -> (i32, i32, i32) {
    %c0_i32 = arith.constant 0 : i32
    %c0_i32_0 = arith.constant 0 : i32
    %c0_i32_1 = arith.constant 0 : i32
    return %arg0, %c0_i32, %c0_i32_0 : i32, i32, i32
  }
  func.func @transform_7(%arg0: i32) -> (i32, i32, i32, i32) {
    %c0_i32 = arith.constant 0 : i32
    %c0_i32_0 = arith.constant 0 : i32
    %c0_i32_1 = arith.constant 0 : i32
    %c0_i32_2 = arith.constant 0 : i32
    return %arg0, %c0_i32, %c0_i32_0, %c0_i32_1 : i32, i32, i32, i32
  }
  func.func @transform_8(%arg0: i32) -> (i32, i32, i32, i32) {
    %c0_i32 = arith.constant 0 : i32
    %c0_i32_0 = arith.constant 0 : i32
    %c0_i32_1 = arith.constant 0 : i32
    %c0_i32_2 = arith.constant 0 : i32
    return %arg0, %c0_i32, %c0_i32_0, %c0_i32_1 : i32, i32, i32, i32
  }
  func.func @transform_9(%arg0: i32) -> (i32, i32, i32, i32) {
    %c0_i32 = arith.constant 0 : i32
    %c0_i32_0 = arith.constant 0 : i32
    %c0_i32_1 = arith.constant 0 : i32
    %c0_i32_2 = arith.constant 0 : i32
    return %arg0, %c0_i32, %c0_i32_0, %c0_i32_1 : i32, i32, i32, i32
  }
  func.func @transform_10(%arg0: i32) -> (i32, i32, i32, i32) {
    %c0_i32 = arith.constant 0 : i32
    %c0_i32_0 = arith.constant 0 : i32
    %c0_i32_1 = arith.constant 0 : i32
    %c0_i32_2 = arith.constant 0 : i32
    return %arg0, %c0_i32, %c0_i32_0, %c0_i32_1 : i32, i32, i32, i32
  }
  func.func @transform_11(%arg0: i32) -> (i32, i32, i32, i32) {
    %c0_i32 = arith.constant 0 : i32
    %c0_i32_0 = arith.constant 0 : i32
    %c0_i32_1 = arith.constant 0 : i32
    %c0_i32_2 = arith.constant 0 : i32
    return %arg0, %c0_i32, %c0_i32_0, %c0_i32_1 : i32, i32, i32, i32
  }
  func.func @transform_12(%arg0: i32) -> (i32, i32, i32, i32) {
    %c0_i32 = arith.constant 0 : i32
    %c0_i32_0 = arith.constant 0 : i32
    %c0_i32_1 = arith.constant 0 : i32
    %c0_i32_2 = arith.constant 0 : i32
    return %arg0, %c0_i32, %c0_i32_0, %c0_i32_1 : i32, i32, i32, i32
  }
  func.func @transform_13(%arg0: i32) -> (i32, i32, i32, i32) {
    %c0_i32 = arith.constant 0 : i32
    %c0_i32_0 = arith.constant 0 : i32
    %c0_i32_1 = arith.constant 0 : i32
    %c0_i32_2 = arith.constant 0 : i32
    return %arg0, %c0_i32, %c0_i32_0, %c0_i32_1 : i32, i32, i32, i32
  }
  func.func @transform_14(%arg0: i32) -> (i32, i32, i32) {
    %c0_i32 = arith.constant 0 : i32
    %c0_i32_0 = arith.constant 0 : i32
    %c0_i32_1 = arith.constant 0 : i32
    return %arg0, %c0_i32, %c0_i32_0 : i32, i32, i32
  }
  func.func @transform_15(%arg0: i32) -> (i32, i32, i32) {
    %c0_i32 = arith.constant 0 : i32
    %c0_i32_0 = arith.constant 0 : i32
    %c0_i32_1 = arith.constant 0 : i32
    return %arg0, %c0_i32, %c0_i32_0 : i32, i32, i32
  }
  func.func @transform_16(%arg0: i32) -> (i32, i32, i32) {
    %c0_i32 = arith.constant 0 : i32
    %c0_i32_0 = arith.constant 0 : i32
    %c0_i32_1 = arith.constant 0 : i32
    return %arg0, %c0_i32, %c0_i32_0 : i32, i32, i32
  }
  func.func @transform_17(%arg0: i32) -> (i32, i32, i32) {
    %c0_i32 = arith.constant 0 : i32
    %c0_i32_0 = arith.constant 0 : i32
    %c0_i32_1 = arith.constant 0 : i32
    return %arg0, %c0_i32, %c0_i32_0 : i32, i32, i32
  }
  func.func @transform_18(%arg0: i32) -> (i32, i32, i32) {
    %c0_i32 = arith.constant 0 : i32
    %c0_i32_0 = arith.constant 0 : i32
    %c0_i32_1 = arith.constant 0 : i32
    return %arg0, %c0_i32, %c0_i32_0 : i32, i32, i32
  }
  func.func @transform_19(%arg0: i32) -> (i32, i32, i32) {
    %c0_i32 = arith.constant 0 : i32
    %c0_i32_0 = arith.constant 0 : i32
    %c0_i32_1 = arith.constant 0 : i32
    return %arg0, %c0_i32, %c0_i32_0 : i32, i32, i32
  }
  func.func @transform_20(%arg0: i32) -> (i32, i32, i32) {
    %c0_i32 = arith.constant 0 : i32
    %c0_i32_0 = arith.constant 0 : i32
    %c0_i32_1 = arith.constant 0 : i32
    return %arg0, %c0_i32, %c0_i32_0 : i32, i32, i32
  }
  func.func @transform_21(%arg0: i32) -> (i32, i32, i32) {
    %c0_i32 = arith.constant 0 : i32
    %c0_i32_0 = arith.constant 0 : i32
    %c0_i32_1 = arith.constant 0 : i32
    return %arg0, %c0_i32, %c0_i32_0 : i32, i32, i32
  }
  func.func @transform_22(%arg0: i32) -> (i32, i32, i32) {
    %c0_i32 = arith.constant 0 : i32
    %c0_i32_0 = arith.constant 0 : i32
    %c0_i32_1 = arith.constant 0 : i32
    return %arg0, %c0_i32, %c0_i32_0 : i32, i32, i32
  }
  func.func @transform_23(%arg0: i32) -> (i32, i32) {
    %c0_i32 = arith.constant 0 : i32
    %c0_i32_0 = arith.constant 0 : i32
    %c0_i32_1 = arith.constant 0 : i32
    return %c0_i32, %c0_i32_0 : i32, i32
  }
  func.func @transform_24(%arg0: i32) -> (i32, i32) {
    %c0_i32 = arith.constant 0 : i32
    %c0_i32_0 = arith.constant 0 : i32
    %c0_i32_1 = arith.constant 0 : i32
    return %c0_i32, %c0_i32_0 : i32, i32
  }
  func.func @transform_25(%arg0: i32) -> (i32, i32) {
    %c0_i32 = arith.constant 0 : i32
    %c0_i32_0 = arith.constant 0 : i32
    %c0_i32_1 = arith.constant 0 : i32
    return %c0_i32, %c0_i32_0 : i32, i32
  }
  func.func @transform_26(%arg0: i32) -> (i32, i32) {
    %c0_i32 = arith.constant 0 : i32
    %c0_i32_0 = arith.constant 0 : i32
    %c0_i32_1 = arith.constant 0 : i32
    return %c0_i32, %c0_i32_0 : i32, i32
  }
  func.func @transform_27(%arg0: i32) -> (i32, i32) {
    %c0_i32 = arith.constant 0 : i32
    %c0_i32_0 = arith.constant 0 : i32
    %c0_i32_1 = arith.constant 0 : i32
    return %c0_i32, %c0_i32_0 : i32, i32
  }
}

</mosaic_0001>

<bundles_post_ra>
// kernel: forward.1
= control target key start
LH: loop header
LB: loop body
LE: loop exit
PB: predicated region body
PF: predicated region fallthrough
CT: control target
= control target key end

     0   :  { %s4225_s0 = inlined_call_operand.vmem [shape: bf16[32,48], index: 0, kind: input, shape index: {}]   ;;  %s4226_s1 = inlined_call_operand.vmem [shape: bf16[48,32], index: 1, kind: input, shape index: {}]   ;;  %s4227_s2 = inlined_call_operand.vmem [shape: f32[32,32], index: 2, kind: input, shape index: {}]   ;;  %s4228_s3 = inlined_call_operand.vmem [shape: f32[5,32], index: 3, kind: input, shape index: {}]   ;;  %s4229_s4 = inlined_call_operand.vmem [shape: f32[42,42], index: 4, kind: input, shape index: {}]   ;;  %s4230_s5 = inlined_call_operand.vmem [shape: f32[2,1,32], index: 5, kind: input, shape index: {}]   ;;  %s4231_s6 = inlined_call_operand.vmem [shape: f32[2,1,32], index: 6, kind: input, shape index: {}]   ;;  %s4232_s7 = inlined_call_operand.vmem [shape: bf16[2,2,32,16], index: 7, kind: input, shape index: {}]   ;;  %s4233_s8 = inlined_call_operand.vmem [shape: f32[2,2,1,16], index: 8, kind: input, shape index: {}]   ;;  %s4234_s9 = inlined_call_operand.vmem [shape: bf16[2,2,32,16], index: 9, kind: input, shape index: {}]   ;;  %s4235_s10 = inlined_call_operand.vmem [shape: f32[2,2,1,16], index: 10, kind: input, shape index: {}]   ;;  %s4236_s11 = inlined_call_operand.vmem [shape: bf16[2,2,32,16], index: 11, kind: input, shape index: {}]   ;;  %s4237_s12 = inlined_call_operand.vmem [shape: f32[2,2,1,16], index: 12, kind: input, shape index: {}]   ;;  %s4238_s13 = inlined_call_operand.vmem [shape: bf16[2,2,16,32], index: 13, kind: input, shape index: {}]   ;;  %s4239_s14 = inlined_call_operand.vmem [shape: f32[2,1,32], index: 14, kind: input, shape index: {}]   ;;  %s4240_s15 = inlined_call_operand.vmem [shape: f32[2,1,32], index: 15, kind: input, shape index: {}]   ;;  %s4241_s16 = inlined_call_operand.vmem [shape: f32[2,1,32], index: 16, kind: input, shape index: {}]   ;;  %s4242_s17 = inlined_call_operand.vmem [shape: f32[2,1,32], index: 17, kind: input, shape index: {}]   ;;  %s4243_s18 = inlined_call_operand.vmem [shape: bf16[2,32,128], index: 18, kind: input, shape index: {}]   ;;  %s4244_s19 = inlined_call_operand.vmem [shape: f32[2,1,128], index: 19, kind: input, shape index: {}]   ;;  %s4245_s20 = inlined_call_operand.vmem [shape: bf16[2,128,32], index: 20, kind: input, shape index: {}]   ;;  %s4246_s21 = inlined_call_operand.vmem [shape: f32[2,1,32], index: 21, kind: input, shape index: {}]   ;;  %s4247_s22 = inlined_call_operand.vmem [shape: f32[2,1,32], index: 22, kind: input, shape index: {}]   ;;  %s4248_s23 = inlined_call_operand.vmem [shape: f32[1,32], index: 23, kind: input, shape index: {}]   ;;  %s4249_s24 = inlined_call_operand.vmem [shape: f32[1,32], index: 24, kind: input, shape index: {}]   ;;  %s4250_s25 = inlined_call_operand.vmem [shape: bf16[32,5], index: 25, kind: input, shape index: {}]   ;;  %s4251_s26 = inlined_call_operand.vmem [shape: f32[1,5], index: 26, kind: input, shape index: {}]   ;;  %s4252_s27 = inlined_call_operand.hbm [shape: f32[2,5], index: 27, kind: output, shape index: {}]  }
   0x1   :  { %4264 = sst [smem:[#allocation11_spill]] %s4225_s0 }
   0x2   :  { %4265 = sst [smem:[#allocation12_spill]] %s4226_s1 }
   0x3   :  { %4266 = sst [smem:[#allocation13_spill]] %s4227_s2 }
   0x4   :  { %4267 = sst [smem:[#allocation14_spill]] %s4228_s3 }
   0x5   :  { %4268 = sst [smem:[#allocation15_spill]] %s4229_s4 }
   0x6   :  { %4269 = sst [smem:[#allocation16_spill]] %s4230_s5 }
   0x7   :  { %4270 = sst [smem:[#allocation17_spill]] %s4231_s6 }
   0x8   :  { %4271 = sst [smem:[#allocation18_spill]] %s4232_s7 }
   0x9   :  { %4272 = sst [smem:[#allocation19_spill]] %s4233_s8 }
   0xa   :  { %4273 = sst [smem:[#allocation20_spill]] %s4234_s9 }
   0xb   :  { %4274 = sst [smem:[#allocation21_spill]] %s4235_s10 }
   0xc   :  { %4275 = sst [smem:[#allocation22_spill]] %s4236_s11 }
   0xd   :  { %4276 = sst [smem:[#allocation23_spill]] %s4237_s12 }
   0xe   :  { %4277 = sst [smem:[#allocation24_spill]] %s4238_s13 }
   0xf   :  { %4278 = sst [smem:[#allocation25_spill]] %s4248_s23 }
  0x10   :  { %4279 = sst [smem:[#allocation26_spill]] %s4249_s24 }
  0x11   :  { %4280 = sst [smem:[#allocation27_spill]] %s4250_s25 }
  0x12   :  { %4281 = sst [smem:[#allocation28_spill]] %s4251_s26 }
  0x13   :  { %4282 = sst [smem:[#allocation29_spill]] %s4252_s27 }
  0x14   :  { %32 = vsyncpa [#allocation4], 0  ;;  %s3513_s7 = smov 0  }
  0x15 LB: > { %4283 = sst [smem:[#allocation6_spill]] %s3369_s7  ;;  %s3519_s4 = sadd.s32 4294967295, %s3369_s7   ;;  %s3369_s7 = sphi %s3513_s7, %s38_s7  }
  0x16   : > { %4284 = sst [smem:[#allocation7_spill]] %s3519_s4  ;;  %p2948_p0 = scmp.ge.s32.totalorder %s3369_s7, 1 }
  0x17   : > { %p882_p1 = scmp.lt.s32.totalorder %s3369_s7, 3 }
  0x19   : > { %p883_p2 = pnand %p2948_p0, %p882_p1 }
  0x1b   : > { %886 = sbr.rel (%p883_p2) target bundleno = 2851 (0xb23), region = 128 }
  0x20   : > { %p1013_p3 = scmp.lt.s32.totalorder %s3519_s4, 1  ;;  %s4287_s30 = sld [smem:[#allocation18_spill]] }
  0x21   : > { %s4289_s26 = sld [smem:[#allocation19_spill]] }
  0x22   : > { %s3525_s8 = scalar_select %p1013_p3, %s3519_s4, 1 }
  0x23   : > { %s4291_s23 = sld [smem:[#allocation20_spill]] }
  0x24   : > { %s3159_s6 = sshll.u32 %s3525_s8, 5  ;;  %s2951_s11 = sshll.u32 %s3525_s8, 1 }
  0x25   : > { %s4293_s1 = sld [smem:[#allocation21_spill]]  ;;  %s3162_s7 = sshll.u32 %s3525_s8, 4 }
  0x26   : > { %s3540_s9 = scalar_lea.vmem %s4287_s30, %s3159_s6  ;;  %s4294_s30 = sld [smem:[#allocation22_spill]] }
  0x27   : > { %4288 = sst [smem:[#allocation8_spill]] %s3540_s9  ;;  %s3545_s24 = scalar_lea.vmem %s4289_s26, %s2951_s11 }
  0x28   : > { %4290 = sst [smem:[#allocation9_spill]] %s3545_s24  ;;  %s1062_s27 = scalar_lea.vmem %s4242_s17, %s3525_s8 }
  0x29   : > { %s3550_s0 = scalar_lea.vmem %s4291_s23, %s3159_s6  ;;  %s4295_s12 = sld [smem:[#allocation23_spill]] }
  0x2a   : > { %4292 = sst [smem:[#allocation10_spill]] %s3550_s0  ;;  %s3592_s5 = scalar_lea.vmem %s4243_s18, %s3162_s7 }
  0x2b   : > { %s3555_s25 = scalar_lea.vmem %s4293_s1, %s2951_s11  ;;  %s4296_s13 = sld [smem:[#allocation24_spill]] }
  0x2c   : > { %s3560_s9 = scalar_lea.vmem %s4294_s30, %s3159_s6  ;;  %s1070_s23 = scalar_lea.vmem %s4244_s19, %s3525_s8 }
  0x2d   : > { %s1078_s6 = scalar_lea.vmem %s4246_s21, %s3525_s8 }
  0x2f   : > { %s3565_s26 = scalar_lea.vmem %s4295_s12, %s2951_s11 }
  0x31   : > { %s3575_s1 = scalar_lea.vmem %s4296_s13, %s3162_s7  ;;  %s3164_s13 = sshll.u32 %s3525_s8, 6 }
  0x32   : > { %s3606_s4 = scalar_lea.vmem %s4245_s20, %s3164_s13  ;;  %s4297_s7 = sld [smem:[#allocation7_spill]] }
  0x38   : > { %p2964_p4 = scmp.ne.s32.totalorder %s4297_s7, 0 }
  0x39   : > { %s4298_s0 = sld [smem:[#allocation12_spill]] (!%p2964_p4) }
  0x3a   : > { %1086 = sbr.rel (%p2964_p4) target bundleno = 213 (0xd5), region = 132  ;;  %s4299_s30 = sld [smem:[#allocation11_spill]] (!%p2964_p4) }
  0x3b   : > { %s4300_s10 = sld [smem:[#allocation14_spill]] (!%p2964_p4) }
  0x3c   : > { %s4301_s12 = sld [smem:[#allocation13_spill]] (!%p2964_p4) }
  0x3f   : > { %v3169_v0 = vld [vmem:[%s4298_s0 + $0x10] sm:$0xff]  ;;  %v3168_v1 = vld [vmem:[%s4298_s0 + $0x8] sm:$0xff]  ;;  %v3167_v2 = vld [vmem:[%s4298_s0] sm:$0xff]  ;;  %vm1129_vm0 = vcmask 392192   ;;  %vm1156_vm1 = vcmask 258048   ;;  %vm1158_vm2 = vcmask 261120  }
  0x40   : > { %1141 = vmatpush.bf16.msra.mxu0 %v3169_v0  ;;  %3196 = vmatpush.bf16.msra.mxu1 %v3169_v0  ;;  %v3165_v3 = vld [vmem:[%s4299_s30] sm:$0xff]  ;;  %v3166_v4 = vld [vmem:[%s4299_s30 + $0x8] sm:$0xff] }
  0x41   : > { %v1155_v5 = vld [vmem:[%s4300_s10] sm:$0x1f] }
  0x42   : > { %v1161_v6 = vld [vmem:[%s4300_s10] sm:$0x1f]  ;;  %1157 = vst.msk [vmem:[#allocation2] sm:$0x1f] %vm1156_vm1, %v1155_v5  ;;  %v1099_v8 = vld [vmem:[%s4301_s12 + $0x10] sm:$0xff]  ;;  %v1098_v13 = vld [vmem:[%s4301_s12 + $0x8] sm:$0xff] }
  0x43   : > { %1162 = vst.msk [vmem:[#allocation2 + $0x15] sm:$0x1f] %vm1156_vm1, %v1161_v6  ;;  %v1097_v7 = vld [vmem:[%s4301_s12] sm:$0xff]  ;;  %v1100_v14 = vld [vmem:[%s4301_s12 + $0x18] sm:$0xff] }
  0x44   : > { %1142 = vmatpush.bf16.msra.mxu0 %v3168_v1  ;;  %3197 = vmatpush.bf16.msra.mxu1 %v3168_v1 }
  0x48   : > { %1143 = vmatpush.bf16.msra.mxu0 %v3167_v2  ;;  %3198 = vmatpush.bf16.msra.mxu1 %v3167_v2 }
  0x4b   : > { %2985 = vmatmul.msk.bf16.vlgmr.msra.gmra.mxu0 %vm1129_vm0, %v3165_v3  ;;  %2986 = vmatmul.msk.bf16.vlgmr.msra.gmra.mxu1 %vm1129_vm0, %v3166_v4 }
  0xc8   : > { %v1145_v9 = vpop.f32.mrf.mxu0  ;;  %v1150_v10 = vpop.f32.mrf.mxu1 }
  0xc9   : > { %v1146_v11 = vadd.f32 %v1145_v9, %v1097_v7  ;;  %v1151_v12 = vadd.f32 %v1150_v10, %v1099_v8 }
  0xcb   : > { %1159 = vst.msk [vmem:[#allocation2 + $0x5] sm:$0xff] %vm1158_vm2, %v1146_v11 }
  0xcc   : > { %1163 = vst.msk [vmem:[#allocation2 + $0x1a] sm:$0xff] %vm1158_vm2, %v1151_v12 }
  0xd0   : > { %v1147_v15 = vpop.f32.mrf.mxu0  ;;  %v1152_v16 = vpop.f32.mrf.mxu1 }
  0xd1   : > { %v1148_v17 = vadd.f32 %v1147_v15, %v1098_v13  ;;  %v1153_v18 = vadd.f32 %v1152_v16, %v1100_v14 }
  0xd3   : > { %1160 = vst.msk [vmem:[#allocation2 + $0xd] sm:$0xff] %vm1158_vm2, %v1148_v17 }
  0xd4   : > { %1164 = vst.msk [vmem:[#allocation2 + $0x22] sm:$0xff] %vm1158_vm2, %v1153_v18 }
  0xd5 PF: > { %vm1173_vm3 = vcmask 261120   ;;  %v1165_v21 = vld [vmem:[#allocation2] sm:$0xff]  ;;  %vm1189_vm4 = vcmask 254976   ;;  %v1168_v26 = vld [vmem:[#allocation2 + $0x18] sm:$0xff]  ;;  %v3371_v31 = vmov 32.0   ;;  %s4302_s2 = sld [smem:[#allocation8_spill]] }
  0xd6   : > { %v1174_v24 = vsel %vm1173_vm3, %v1165_v21, 0.0  ;;  %v1183_v28 = vsel %vm1173_vm3, %v1168_v26, 0.0  ;;  %3234 = vrcp.f32 %v3371_v31  ;;  %s4303_s3 = sld [smem:[#allocation10_spill]] }
  0xd7   : > { %1175 = vadd.xlane.f32.xlu2 %v1174_v24  ;;  %s4308_s28 = sld [smem:[#allocation16_spill]] }
  0xd8   : > { %s4312_s11 = sld [smem:[#allocation17_spill]] }
  0xda   : > { %v1167_v20 = vld [vmem:[#allocation2 + $0x10] sm:$0xff]  ;;  %v1166_v29 = vld [vmem:[#allocation2 + $0x8] sm:$0xff] }
  0xdb   : > { %v1169_v19 = vld [vmem:[#allocation2 + $0x20] sm:$0xff]  ;;  %v1180_v23 = vsel %vm1173_vm3, %v1167_v20, 0.0  ;;  %v1170_v25 = vld [vmem:[#allocation2 + $0x28] sm:$0x3]  ;;  %v1177_v30 = vsel %vm1173_vm3, %v1166_v29, 0.0 }
  0xdc   : > { %v1186_v22 = vsel %vm1173_vm3, %v1169_v19, 0.0  ;;  %1181 = vadd.xlane.f32.xlu0 %v1180_v23  ;;  %v1190_v27 = vsel %vm1189_vm4, %v1170_v25, 0.0  ;;  %v3235_v32 = vpop.eup %3234  ;;  %v3171_v6 = vld [vmem:[%s4302_s2 + $0x8] sm:$0xff]  ;;  %v3170_v12 = vld [vmem:[%s4302_s2] sm:$0xff] }
  0xdd   : > { %1187 = vadd.xlane.f32.xlu1 %v1186_v22  ;;  %v1194_v33 = vmul.f32 32.0, %v3235_v32  ;;  %vm1198_vm5 = vweird.f32 %v3235_v32  ;;  %v3173_v7 = vld [vmem:[%s4303_s3 + $0x8] sm:$0xff]  ;;  %3199 = vmatpush.bf16.msra.mxu3 %v3171_v6  ;;  %v3172_v13 = vld [vmem:[%s4303_s3] sm:$0xff]  ;;  %s4309_s24 = scalar_lea.vmem %s4308_s28, %s3525_s8 }
  0xde   : > { %3201 = vmatpush.bf16.msra.mxu1 %v3173_v7  ;;  %1370 = vmatpush.bf16.msra.mxu2 %v3171_v6  ;;  %s4313_s7 = scalar_lea.vmem %s4312_s11, %s3525_s8  ;;  %s4317_s11 = scalar_lea.vmem %s4240_s15, %s3525_s8 }
  0xdf   : > { %1178 = vadd.xlane.f32.xlu2 %v1177_v30  ;;  %v1195_v34 = vsub.f32 1.0, %v1194_v33  ;;  %1414 = vmatpush.bf16.msra.mxu0 %v3173_v7 }
  0xe1   : > { %v1196_v35 = vmul.f32 %v3235_v32, %v1195_v34  ;;  %3200 = vmatpush.bf16.msra.mxu3 %v3170_v12 }
  0xe2   : > { %3202 = vmatpush.bf16.msra.mxu1 %v3172_v13  ;;  %1371 = vmatpush.bf16.msra.mxu2 %v3170_v12 }
  0xe3   : > { %v1197_v36 = vadd.f32 %v3235_v32, %v1196_v35  ;;  %1415 = vmatpush.bf16.msra.mxu0 %v3172_v13 }
  0xe4   : > { %1184 = vadd.xlane.f32.xlu0 %v1183_v28 }
  0xe5   : > { %1191 = vadd.xlane.f32.xlu1 %v1190_v27  ;;  %v3652_v37 = vsel %vm1198_vm5, %v3235_v32, %v1197_v36 }
 0x14a   : > { %v1176_v42 = vpop.xlane.xlu2 %1175 }
 0x14b   : > { %v1200_v51 = vmul.f32 %v3652_v37, %v1176_v42 }
 0x14d   : > { %v3676_v59 = vsub.f32 %v1165_v21, %v1200_v51 }
 0x14f   : > { %v1182_v39 = vpop.xlane.xlu0 %1181  ;;  %v1212_v2 = vmul.f32 %v3676_v59, %v3676_v59 }
 0x150   : > { %v1188_v38 = vpop.xlane.xlu1 %1187  ;;  %v1202_v41 = vmul.f32 %v3652_v37, %v1182_v39 }
 0x151   : > { %v1204_v40 = vmul.f32 %v3652_v37, %v1188_v38  ;;  %v1218_v3 = vsel %vm1173_vm3, %v1212_v2, 0.0 }
 0x152   : > { %v3658_v44 = vsub.f32 %v1167_v20, %v1202_v41  ;;  %v1179_v54 = vpop.xlane.xlu2 %1178 }
 0x153   : > { %v3656_v43 = vsub.f32 %v1169_v19, %v1204_v40  ;;  %v1201_v55 = vmul.f32 %v3652_v37, %v1179_v54 }
 0x154   : > { %v1214_v45 = vmul.f32 %v3658_v44, %v3658_v44 }
 0x155   : > { %v1216_v46 = vmul.f32 %v3656_v43, %v3656_v43  ;;  %v3674_v58 = vsub.f32 %v1166_v29, %v1201_v55 }
 0x156   : > { %v1224_v47 = vsel %vm1173_vm3, %v1214_v45, 0.0  ;;  %v3221_v45 = vld [vmem:[%s3555_s25] ss:$0 sm:$0xff] }
 0x157   : > { %v1230_v48 = vsel %vm1173_vm3, %v1216_v46, 0.0  ;;  %1225 = vadd.xlane.f32.xlu0 %v1224_v47  ;;  %v1185_v50 = vpop.xlane.xlu0 %1184  ;;  %v1213_v62 = vmul.f32 %v3674_v58, %v3674_v58 }
 0x158   : > { %v1192_v49 = vpop.xlane.xlu1 %1191  ;;  %1231 = vadd.xlane.f32.xlu2 %v1230_v48  ;;  %v1203_v53 = vmul.f32 %v3652_v37, %v1185_v50 }
 0x159   : > { %v1205_v52 = vmul.f32 %v3652_v37, %v1192_v49  ;;  %v1221_v1 = vsel %vm1173_vm3, %v1213_v62, 0.0 }
 0x15a   : > { %v3672_v57 = vsub.f32 %v1168_v26, %v1203_v53 }
 0x15b   : > { %v3670_v56 = vsub.f32 %v1170_v25, %v1205_v52 }
 0x15c   : > { %v1215_v61 = vmul.f32 %v3672_v57, %v3672_v57 }
 0x15d   : > { %v1217_v60 = vmul.f32 %v3670_v56, %v3670_v56 }
 0x15e   : > { %v1227_v0 = vsel %vm1173_vm3, %v1215_v61, 0.0 }
 0x15f   : > { %v1233_v63 = vsel %vm1189_vm4, %v1217_v60, 0.0  ;;  %1228 = vadd.xlane.f32.xlu1 %v1227_v0 }
 0x160   : > { %1234 = vadd.xlane.f32.xlu0 %v1233_v63  ;;  %1222 = vadd.xlane.f32.xlu2 %v1221_v1  ;;  %v3219_v63 = vld [vmem:[%s4309_s24] ss:$0 sm:$0xff] }
 0x167   : > { %1219 = vadd.xlane.f32.xlu1 %v1218_v3 }
 0x1ca   : > { %v1226_v4 = vpop.xlane.xlu0 %1225 }
 0x1cb   : > { %v1232_v5 = vpop.xlane.xlu2 %1231  ;;  %v1238_v8 = vmul.f32 %v1226_v4, %v3652_v37 }
 0x1cc   : > { %v1240_v9 = vmul.f32 %v1232_v5, %v3652_v37 }
 0x1cd   : > { %v1244_v10 = vadd.f32 1e-06, %v1238_v8 }
 0x1ce   : > { %v1246_v11 = vadd.f32 1e-06, %v1240_v9 }
 0x1cf   : > { %3236 = vrsqrt.f32 %v1244_v10  ;;  %vm1274_vm10 = vweird.f32 %v1244_v10 }
 0x1d0   : > { %3238 = vrsqrt.f32 %v1246_v11  ;;  %vm1294_vm6 = vweird.f32 %v1246_v11 }
 0x1d2   : > { %v1229_v14 = vpop.xlane.xlu1 %1228 }
 0x1d3   : > { %v1235_v15 = vpop.xlane.xlu0 %1234  ;;  %v1239_v16 = vmul.f32 %v1229_v14, %v3652_v37  ;;  %v1223_v18 = vpop.xlane.xlu2 %1222  ;;  %v3178_v14 = vld [vmem:[%s4302_s2 + $0x18] sm:$0xff] }
 0x1d4   : > { %v1241_v17 = vmul.f32 %v1235_v15, %v3652_v37  ;;  %v1237_v19 = vmul.f32 %v1223_v18, %v3652_v37  ;;  %1675 = vmatpush.bf16.msrb.mxu1 %v3178_v14 }
 0x1d5   : > { %v3237_v20 = vpop.eup %3236  ;;  %v1245_v21 = vadd.f32 1e-06, %v1239_v16 }
 0x1d6   : > { %v1247_v22 = vadd.f32 1e-06, %v1241_v17  ;;  %v3239_v23 = vpop.eup %3238  ;;  %v1269_v24 = vmul.f32 %v3237_v20, %v1244_v10  ;;  %v1243_v25 = vadd.f32 1e-06, %v1237_v19  ;;  %vm1275_vm8 = vweird.f32 %v3237_v20  ;;  %v3177_v19 = vld [vmem:[%s4302_s2 + $0x10] sm:$0xff]  ;;  %s4314_s2 = sld [smem:[#allocation9_spill]] }
 0x1d7   : > { %v1289_v26 = vmul.f32 %v3239_v23, %v1246_v11  ;;  %3240 = vrsqrt.f32 %v1245_v21  ;;  %vm1295_vm7 = vweird.f32 %v3239_v23  ;;  %vm3704_vm11 = vmor %vm1274_vm10, %vm1275_vm8  ;;  %vm1284_vm13 = vweird.f32 %v1245_v21 }
 0x1d8   : > { %v1270_v27 = vmul.f32 %v3237_v20, %v1269_v24  ;;  %3242 = vrsqrt.f32 %v1247_v22  ;;  %vm3700_vm9 = vmor %vm1294_vm6, %vm1295_vm7  ;;  %vm1304_vm14 = vweird.f32 %v1247_v22  ;;  %vm1264_vm0 = vweird.f32 %v1243_v25  ;;  %1676 = vmatpush.bf16.msrb.mxu1 %v3177_v19 }
 0x1d9   : > { %v1290_v28 = vmul.f32 %v3239_v23, %v1289_v26  ;;  %3244 = vrsqrt.f32 %v1243_v25  ;;  %vm1488_vm10 = vcmask 130048  }
 0x1da   : > { %v1271_v29 = vmul.f32 0.5, %v1270_v27  ;;  %v1220_v30 = vpop.xlane.xlu1 %1219 }
 0x1db   : > { %v1291_v31 = vmul.f32 0.5, %v1290_v28  ;;  %v1236_v32 = vmul.f32 %v1220_v30, %v3652_v37 }
 0x1dc   : > { %v1272_v33 = vsub.f32 1.5, %v1271_v29 }
 0x1dd   : > { %v3241_v34 = vpop.eup %3240  ;;  %v1292_v35 = vsub.f32 1.5, %v1291_v31  ;;  %v1242_v36 = vadd.f32 1e-06, %v1236_v32  ;;  %v3174_v32 = vld [vmem:[%s3560_s9] sm:$0xff] }
 0x1de   : > { %v3243_v38 = vpop.eup %3242  ;;  %v1273_v39 = vmul.f32 %v3237_v20, %v1272_v33  ;;  %v1279_v40 = vmul.f32 %v3241_v34, %v1245_v21  ;;  %vm1285_vm12 = vweird.f32 %v3241_v34 }
 0x1df   : > { %v3245_v41 = vpop.eup %3244  ;;  %v1293_v42 = vmul.f32 %v3239_v23, %v1292_v35  ;;  %v1299_v46 = vmul.f32 %v3243_v38, %v1247_v22  ;;  %3246 = vrsqrt.f32 %v1242_v36  ;;  %vm1305_vm15 = vweird.f32 %v3243_v38  ;;  %vm1286_vm2 = vmor %vm1284_vm13, %vm1285_vm12 }
 0x1e0   : > { %v1280_v47 = vmul.f32 %v3241_v34, %v1279_v40  ;;  %v1259_v48 = vmul.f32 %v3245_v41, %v1243_v25  ;;  %v1277_v51 = vsel %vm3704_vm11, %v3237_v20, %v1273_v39  ;;  %vm1265_vm1 = vweird.f32 %v3245_v41  ;;  %vm1306_vm5 = vmor %vm1304_vm14, %vm1305_vm15 }
 0x1e1   : > { %v1300_v50 = vmul.f32 %v3243_v38, %v1299_v46  ;;  %v1297_v52 = vsel %vm3700_vm9, %v3239_v23, %v1293_v42  ;;  %v1310_v0 = vmul.f32 %v1277_v51, %v3658_v44  ;;  %vm3720_vm6 = vmor %vm1264_vm0, %vm1265_vm1  ;;  %vm1254_vm7 = vweird.f32 %v1242_v36 }
 0x1e2   : > { %v1281_v53 = vmul.f32 0.5, %v1280_v47  ;;  %v1260_v54 = vmul.f32 %v3245_v41, %v1259_v48  ;;  %v1312_v1 = vmul.f32 %v1297_v52, %v3656_v43  ;;  %v3220_v43 = vld [vmem:[%s4313_s7] ss:$0 sm:$0xff]  ;;  %vm1614_vm11 = vcmask 1044480  }
 0x1e3   : > { %v1301_v55 = vmul.f32 0.5, %v1300_v50  ;;  %v1319_v44 = vmul.f32 %v3219_v63, %v1310_v0  ;;  %vm1531_vm12 = vcmask 343040   ;;  %vm1547_vm13 = vcmask 336896  }
 0x1e4   : > { %v1282_v60 = vsub.f32 1.5, %v1281_v53  ;;  %v1261_v61 = vmul.f32 0.5, %v1260_v54  ;;  %v1321_v11 = vmul.f32 %v3219_v63, %v1312_v1 }
 0x1e5   : > { %v3247_v62 = vpop.eup %3246  ;;  %v1302_v2 = vsub.f32 1.5, %v1301_v55  ;;  %v1328_v22 = vadd.f32 %v3220_v43, %v1319_v44  ;;  %v3181_v44 = vld [vmem:[%s3560_s9 + $0x10] sm:$0xff] }
 0x1e6   : > { %v1283_v3 = vmul.f32 %v3241_v34, %v1282_v60  ;;  %v1262_v4 = vsub.f32 1.5, %v1261_v61  ;;  %v1249_v5 = vmul.f32 %v3247_v62, %v1242_v36  ;;  %vm1255_vm8 = vweird.f32 %v3247_v62  ;;  %v3179_v36 = vld [vmem:[%s4303_s3 + $0x10] sm:$0xff] }
 0x1e7   : > { %v1303_v6 = vmul.f32 %v3243_v38, %v1302_v2  ;;  %vm1256_vm9 = vmor %vm1254_vm7, %vm1255_vm8  ;;  %v3222_v2 = vld [vmem:[%s4314_s2] ss:$0 sm:$0xff] }
 0x1e8   : > { %v1287_v8 = vsel %vm1286_vm2, %v3241_v34, %v1283_v3  ;;  %v1263_v9 = vmul.f32 %v3245_v41, %v1262_v4  ;;  %v1250_v10 = vmul.f32 %v3247_v62, %v1249_v5 }
 0x1e9   : > { %v1311_v12 = vmul.f32 %v1287_v8, %v3672_v57  ;;  %v1307_v13 = vsel %vm1306_vm5, %v3243_v38, %v1303_v6  ;;  %v1330_v57 = vadd.f32 %v3220_v43, %v1321_v11 }
 0x1ea   : > { %v1313_v15 = vmul.f32 %v1307_v13, %v3670_v56  ;;  %v1267_v16 = vsel %vm3720_vm6, %v3245_v41, %v1263_v9  ;;  %v1251_v17 = vmul.f32 0.5, %v1250_v10  ;;  %v3182_v10 = vld [vmem:[%s3560_s9 + $0x18] sm:$0xff] }
 0x1eb   : > { %v1320_v18 = vmul.f32 %v3219_v63, %v1311_v12  ;;  %v1309_v24 = vmul.f32 %v1267_v16, %v3674_v58  ;;  %v3175_v58 = vld [vmem:[%s3560_s9 + $0x8] sm:$0xff] }
 0x1ec   : > { %v1322_v20 = vmul.f32 %v3219_v63, %v1313_v15  ;;  %v1252_v21 = vsub.f32 1.5, %v1251_v17  ;;  %1458 = vmatpush.bf16.msrb.mxu2 %v3175_v58 }
 0x1ed   : > { %v1329_v23 = vadd.f32 %v3220_v43, %v1320_v18  ;;  %v1318_v29 = vmul.f32 %v3219_v63, %v1309_v24 }
 0x1ee   : > { %v1331_v56 = vadd.f32 %v3220_v43, %v1322_v20  ;;  %v1253_v25 = vmul.f32 %v3247_v62, %v1252_v21  ;;  %v3224_v20 = vld [vmem:[%s3565_s26] ss:$0 sm:$0xff] }
 0x1ef   : > { %v3737_v26 = vpack.c.bf16 %v1329_v23, %v1328_v22  ;;  %v1327_v33 = vadd.f32 %v3220_v43, %v1318_v29 }
 0x1f0   : > { %v3739_v27 = vpack.c.bf16 %v1331_v56, %v1330_v57  ;;  %v1257_v28 = vsel %vm1256_vm9, %v3247_v62, %v1253_v25  ;;  %1459 = vmatpush.bf16.msrb.mxu2 %v3174_v32 }
 0x1f1   : > { %v1308_v30 = vmul.f32 %v1257_v28, %v3676_v59  ;;  %3007 = vmatmul.msk.bf16.vlgmr.msra.gmra.mxu1 %vm1173_vm3, %v3737_v26  ;;  %v3180_v59 = vld [vmem:[%s4303_s3 + $0x18] sm:$0xff]  ;;  %s4315_s3 = sld [smem:[#allocation15_spill]] }
 0x1f2   : > { %2997 = vmatmul.msk.bf16.vlgmr.msra.gmra.mxu3 %vm1173_vm3, %v3739_v27 }
 0x1f3   : > { %v1317_v31 = vmul.f32 %v3219_v63, %v1308_v30 }
 0x1f5   : > { %v1326_v34 = vadd.f32 %v3220_v43, %v1317_v31 }
 0x1f7   : > { %v3748_v35 = vpack.c.bf16 %v1327_v33, %v1326_v34 }
 0x1f9   : > { %2995 = vmatmul.msk.bf16.vlgmr.msra.gmra.mxu2 %vm1173_vm3, %v3748_v35  ;;  %3006 = vmatmul.msk.bf16.vlgmr.msra.gmra.mxu0 %vm1173_vm3, %v3748_v35 }
 0x1fa   : > { %1721 = vmatpush.bf16.msra.mxu2 %v3180_v59 }
 0x1fe   : > { %1722 = vmatpush.bf16.msra.mxu2 %v3179_v36  ;;  %v3225_v36 = vld [vmem:[%s3555_s25 + $0x1] ss:$0 sm:$0xff]  ;;  %s4318_s25 = scalar_lea.vmem %s4241_s16, %s3525_s8 }
 0x201   : > { %3008 = vmatmul.msk.bf16.gmra.mxu1 %vm1173_vm3, %v3739_v27 }
 0x209   : > { %2996 = vmatmul.msk.bf16.gmra.mxu2 %vm1173_vm3, %v3737_v26 }
 0x211   : > { %3039 = vmatmul.msk.bf16.vlgmr.msrb.gmra.mxu1 %vm1173_vm3, %v3748_v35 }
 0x219   : > { %3017 = vmatmul.msk.bf16.vlgmr.msrb.gmra.mxu2 %vm1173_vm3, %v3748_v35 }
 0x221   : > { %3040 = vmatmul.msk.bf16.gmra.mxu1 %vm1173_vm3, %v3737_v26 }
 0x229   : > { %3018 = vmatmul.msk.bf16.gmra.mxu2 %vm1173_vm3, %v3737_v26 }
 0x231   : > { %3041 = vmatmul.msk.bf16.gmra.mxu1 %vm1173_vm3, %v3739_v27 }
 0x239   : > { %3019 = vmatmul.msk.bf16.gmra.mxu2 %vm1173_vm3, %v3739_v27 }
 0x249   : > { %3055 = vmatmul.msk.bf16.vlgmr.msra.gmra.mxu2 %vm1173_vm3, %v3748_v35 }
 0x259   : > { %3056 = vmatmul.msk.bf16.gmra.mxu2 %vm1173_vm3, %v3737_v26 }
 0x269   : > { %3057 = vmatmul.msk.bf16.gmra.mxu2 %vm1173_vm3, %v3739_v27 }
 0x26e   : > { %v1422_v38 = vpop.f32.mrf.mxu1 }
 0x26f   : > { %v1423_v54 = vadd.f32 %v3221_v45, %v1422_v38 }
 0x275   : > { %v1383_v12 = vpop.f32.mrf.mxu3 }
 0x276   : > { %v1424_v39 = vpop.f32.mrf.mxu1  ;;  %v1417_v46 = vpop.f32.mrf.mxu0  ;;  %v1384_v18 = vadd.f32 %v3222_v2, %v1383_v12 }
 0x277   : > { %v1425_v51 = vadd.f32 %v3221_v45, %v1424_v39  ;;  %v1418_v0 = vadd.f32 %v3221_v45, %v1417_v46 }
 0x279   : > { %v1480_v55 = vpack.c.bf16 %v1425_v51, %v1423_v54  ;;  %v3810_v54 = vld [vmem:[%s4315_s3 + $0x8] sm:$0xff] }
 0x27b   : > { %v1502_v62 = vsel %vm1488_vm10, %v1480_v55, 0 }
 0x27c   : > { %v1373_v40 = vpop.f32.mrf.mxu2 }
 0x27d   : > { %v1374_v6 = vadd.f32 %v3222_v2, %v1373_v40  ;;  %v1385_v15 = vpop.f32.mrf.mxu3 }
 0x27e   : > { %v1427_v41 = vpop.f32.mrf.mxu1  ;;  %v1419_v60 = vpop.f32.mrf.mxu0  ;;  %v1386_v17 = vadd.f32 %v3222_v2, %v1385_v15 }
 0x27f   : > { %v1428_v48 = vadd.f32 %v3221_v45, %v1427_v41  ;;  %v1420_v61 = vadd.f32 %v3221_v45, %v1419_v60 }
 0x280   : > { %v1478_v19 = vpack.c.bf16 %v1386_v17, %v1384_v18  ;;  %v3226_v17 = vld [vmem:[%s3565_s26 + $0x1] ss:$0 sm:$0xff] }
 0x281   : > { %v1479_v1 = vpack.c.bf16 %v1420_v61, %v1418_v0 }
 0x283   : > { %v1499_v3 = vsel %vm1488_vm10, %v1479_v1, 0 }
 0x284   : > { %v1375_v42 = vpop.f32.mrf.mxu2 }
 0x285   : > { %v1376_v5 = vadd.f32 %v3222_v2, %v1375_v42 }
 0x286   : > { %v1429_v47 = vpop.f32.mrf.mxu1 }
 0x287   : > { %v1430_v49 = vadd.f32 %v3221_v45, %v1429_v47  ;;  %v1476_v7 = vpack.c.bf16 %v1376_v5, %v1374_v6  ;;  %v3831_v6 = vld [vmem:[%s4315_s3 + $0x20] sm:$0xff] }
 0x289   : > { %v1481_v50 = vpack.c.bf16 %v1430_v49, %v1428_v48 }
 0x28b   : > { %v1505_v52 = vsel %vm1488_vm10, %v1481_v50, 0 }
 0x28c   : > { %v1378_v53 = vpop.f32.mrf.mxu2  ;;  %1512 = vmatpush.bf16.xpose.msrb.mxu3 %v1505_v52 }
 0x28d   : > { %v1379_v11 = vadd.f32 %v3222_v2, %v1378_v53 }
 0x294   : > { %v1380_v63 = vpop.f32.mrf.mxu2  ;;  %1513 = vmatpush.bf16.xpose.msrb.mxu3 %v1502_v62  ;;  %v3817_v62 = vld [vmem:[%s4315_s3 + $0x10] sm:$0xff] }
 0x295   : > { %v1381_v43 = vadd.f32 %v3222_v2, %v1380_v63  ;;  %v3824_v2 = vld [vmem:[%s4315_s3 + $0x18] sm:$0xff] }
 0x297   : > { %v1477_v13 = vpack.c.bf16 %v1381_v43, %v1379_v11 }
 0x29c   : > { %v1461_v4 = vpop.f32.mrf.mxu2  ;;  %1514 = vmatpush.bf16.xpose.msrb.mxu3 %v1499_v3 }
 0x29d   : > { %v1462_v58 = vadd.f32 %v3224_v20, %v1461_v4 }
 0x2a3   : > { %3020 = vmatmul.msk.bf16.vlgmr.msrb.gmra.mxu3 %vm1488_vm10, %v1476_v7 }
 0x2a4   : > { %v1463_v8 = vpop.f32.mrf.mxu2  ;;  %1767 = vmatpush.bf16.msra.mxu3 %v3182_v10  ;;  %v3838_v10 = vld [vmem:[%s4315_s3 + $0x28] sm:$0x3] }
 0x2a5   : > { %v1464_v28 = vadd.f32 %v3224_v20, %v1463_v8 }
 0x2a7   : > { %v1602_v31 = vpack.c.bf16 %v1464_v28, %v1462_v58 }
 0x2a8   : > { %1768 = vmatpush.bf16.msra.mxu3 %v3181_v44 }
 0x2ac   : > { %v1466_v9 = vpop.f32.mrf.mxu2 }
 0x2ad   : > { %v1467_v25 = vadd.f32 %v3224_v20, %v1466_v9 }
 0x2b3   : > { %3021 = vmatmul.msk.bf16.gmra.mxu3 %vm1488_vm10, %v1477_v13 }
 0x2b4   : > { %v1468_v14 = vpop.f32.mrf.mxu2 }
 0x2b5   : > { %v1469_v57 = vadd.f32 %v3224_v20, %v1468_v14 }
 0x2b7   : > { %v1603_v30 = vpack.c.bf16 %v1469_v57, %v1467_v25 }
 0x2bc   : > { %v1471_v16 = vpop.f32.mrf.mxu2 }
 0x2bd   : > { %v1472_v22 = vadd.f32 %v3224_v20, %v1471_v16 }
 0x2c3   : > { %3022 = vmatmul.msk.bf16.gmra.mxu3 %vm1488_vm10, %v1478_v19 }
 0x2c4   : > { %v1473_v21 = vpop.f32.mrf.mxu2 }
 0x2c5   : > { %v1474_v23 = vadd.f32 %v3224_v20, %v1473_v21 }
 0x2c7   : > { %v1604_v24 = vpack.c.bf16 %v1474_v23, %v1472_v22 }
 0x2c9   : > { %v1616_v56 = vsel %vm1614_vm11, %v1604_v24, 0 }
 0x2ca   : > { %1623 = vmatpush.bf16.msrb.mxu0 %v1616_v56 }
 0x2cc   : > { %v1724_v29 = vpop.f32.mrf.mxu2 }
 0x2ce   : > { %1624 = vmatpush.bf16.msrb.mxu0 %v1603_v30 }
 0x2d2   : > { %1625 = vmatpush.bf16.msrb.mxu0 %v1602_v31 }
 0x2d3   : > { %3071 = vmatmul.msk.bf16.vlgmr.msra.gmra.mxu3 %vm1173_vm3, %v3748_v35 }
 0x2d4   : > { %v1726_v32 = vpop.f32.mrf.mxu2 }
 0x2d5   : > { %v1727_v47 = vadd.f32 %v3225_v36, %v1726_v32 }
 0x2dc   : > { %v1729_v33 = vpop.f32.mrf.mxu2 }
 0x2dd   : > { %v1730_v35 = vadd.f32 %v3225_v36, %v1729_v33 }
 0x2e3   : > { %3072 = vmatmul.msk.bf16.gmra.mxu3 %vm1173_vm3, %v3737_v26  ;;  %v1725_v26 = vadd.f32 %v3225_v36, %v1724_v29 }
 0x2e4   : > { %v1731_v34 = vpop.f32.mrf.mxu2 }
 0x2e5   : > { %v1732_v42 = vadd.f32 %v3225_v36, %v1731_v34  ;;  %v1788_v49 = vpack.c.bf16 %v1727_v47, %v1725_v26 }
 0x2e7   : > { %v1789_v46 = vpack.c.bf16 %v1732_v42, %v1730_v35  ;;  %v1801_v50 = vsel %vm1488_vm10, %v1788_v49, 0 }
 0x2e9   : > { %v1804_v48 = vsel %vm1488_vm10, %v1789_v46, 0 }
 0x2ec   : > { %v1734_v59 = vpop.f32.mrf.mxu2 }
 0x2ed   : > { %v1735_v39 = vadd.f32 %v3225_v36, %v1734_v59 }
 0x2f3   : > { %3073 = vmatmul.msk.bf16.gmra.mxu3 %vm1173_vm3, %v3739_v27  ;;  %v3803_v27 = vld [vmem:[%s4315_s3] sm:$0xff] }
 0x2f4   : > { %v1736_v38 = vpop.f32.mrf.mxu2 }
 0x2f5   : > { %v1737_v40 = vadd.f32 %v3225_v36, %v1736_v38 }
 0x2f7   : > { %v1790_v41 = vpack.c.bf16 %v1737_v40, %v1735_v39 }
 0x2f9   : > { %v1807_v45 = vsel %vm1488_vm10, %v1790_v41, 0 }
 0x2fa   : > { %1814 = vmatpush.bf16.xpose.msra.mxu0 %v1807_v45 }
 0x302   : > { %1815 = vmatpush.bf16.xpose.msra.mxu0 %v1804_v48 }
 0x30a   : > { %1816 = vmatpush.bf16.xpose.msra.mxu0 %v1801_v50 }
 0x326   : > { %v1516_v51 = vpop.f32.mrf.mxu3 }
 0x327   : > { %v1517_v52 = vadd.f32 %v1516_v51, %v3803_v27 }
 0x329   : > { %v1532_v53 = vsel %vm1531_vm12, %v1517_v52, -inf }
 0x32a   : > { %1533 = vmax.xlane.f32.xlu0 %v1532_v53 }
 0x32e   : > { %v1518_v55 = vpop.f32.mrf.mxu3 }
 0x32f   : > { %v1519_v60 = vadd.f32 %v1518_v55, %v3810_v54 }
 0x331   : > { %v1535_v61 = vsel %vm1531_vm12, %v1519_v60, -inf }
 0x332   : > { %1536 = vmax.xlane.f32.xlu1 %v1535_v61 }
 0x336   : > { %v1521_v63 = vpop.f32.mrf.mxu3 }
 0x337   : > { %v1522_v0 = vadd.f32 %v1521_v63, %v3817_v62 }
 0x339   : > { %v1538_v1 = vsel %vm1531_vm12, %v1522_v0, -inf }
 0x33a   : > { %1539 = vmax.xlane.f32.xlu2 %v1538_v1 }
 0x33e   : > { %v1523_v3 = vpop.f32.mrf.mxu3 }
 0x33f   : > { %v1524_v4 = vadd.f32 %v1523_v3, %v3824_v2 }
 0x341   : > { %v1541_v5 = vsel %vm1531_vm12, %v1524_v4, -inf }
 0x342   : > { %1542 = vmax.xlane.f32.xlu0 %v1541_v5 }
 0x346   : > { %v1526_v7 = vpop.f32.mrf.mxu3 }
 0x347   : > { %v1527_v8 = vadd.f32 %v1526_v7, %v3831_v6 }
 0x349   : > { %v1544_v9 = vsel %vm1531_vm12, %v1527_v8, -inf }
 0x34a   : > { %1545 = vmax.xlane.f32.xlu1 %v1544_v9 }
 0x34e   : > { %v1528_v43 = vpop.f32.mrf.mxu3 }
 0x34f   : > { %v1529_v44 = vadd.f32 %v1528_v43, %v3838_v10 }
 0x351   : > { %v1548_v11 = vsel %vm1547_vm13, %v1529_v44, -inf }
 0x352   : > { %1549 = vmax.xlane.f32.xlu2 %v1548_v11 }
 0x356   : > { %v1770_v12 = vpop.f32.mrf.mxu3 }
 0x357   : > { %v1771_v25 = vadd.f32 %v3226_v17, %v1770_v12 }
 0x35e   : > { %v1772_v13 = vpop.f32.mrf.mxu3 }
 0x35f   : > { %v1773_v57 = vadd.f32 %v3226_v17, %v1772_v13 }
 0x361   : > { %v1902_v28 = vpack.c.bf16 %v1773_v57, %v1771_v25  ;;  %v3223_v57 = vld [vmem:[%s4314_s2 + $0x1] ss:$0 sm:$0xff]  ;;  %s4316_s2 = scalar_lea.vmem %s4239_s14, %s3525_s8 }
 0x366   : > { %v1775_v14 = vpop.f32.mrf.mxu3 }
 0x367   : > { %v1776_v24 = vadd.f32 %v3226_v17, %v1775_v14 }
 0x36e   : > { %v1777_v15 = vpop.f32.mrf.mxu3 }
 0x36f   : > { %v1778_v22 = vadd.f32 %v3226_v17, %v1777_v15 }
 0x371   : > { %v1903_v56 = vpack.c.bf16 %v1778_v22, %v1776_v24 }
 0x376   : > { %v1780_v16 = vpop.f32.mrf.mxu3 }
 0x377   : > { %v1781_v19 = vadd.f32 %v3226_v17, %v1780_v16 }
 0x37e   : > { %v1782_v18 = vpop.f32.mrf.mxu3 }
 0x37f   : > { %v1783_v20 = vadd.f32 %v3226_v17, %v1782_v18  ;;  %v1678_v18 = vpop.f32.mrf.mxu1 }
 0x381   : > { %v1904_v21 = vpack.c.bf16 %v1783_v20, %v1781_v19 }
 0x383   : > { %v1915_v23 = vsel %vm1614_vm11, %v1904_v21, 0 }
 0x384   : > { %1922 = vmatpush.bf16.msra.mxu1 %v1915_v23 }
 0x387   : > { %v1680_v24 = vpop.f32.mrf.mxu1 }
 0x388   : > { %1923 = vmatpush.bf16.msra.mxu1 %v1903_v56  ;;  %v1681_v25 = vadd.f32 %v3223_v57, %v1680_v24 }
 0x38c   : > { %1924 = vmatpush.bf16.msra.mxu1 %v1902_v28  ;;  %v1679_v28 = vadd.f32 %v3223_v57, %v1678_v18 }
 0x38f   : > { %v1683_v56 = vpop.f32.mrf.mxu1 }
 0x39d   : > { %v1534_v29 = vpop.xlane.xlu0 %1533 }
 0x39e   : > { %v1551_v30 = vsub.f32 %v1517_v52, %v1534_v29  ;;  %v1785_v29 = vpack.c.bf16 %v1681_v25, %v1679_v28 }
 0x3a0   : > { %v1557_v58 = vmul.f32 1.442695, %v1551_v30  ;;  %v1685_v30 = vpop.f32.mrf.mxu1 }
 0x3a2   : > { %3248 = vpow2.f32 %v1557_v58  ;;  %v1686_v58 = vadd.f32 %v3223_v57, %v1685_v30 }
 0x3a5   : > { %v1537_v31 = vpop.xlane.xlu1 %1536 }
 0x3a6   : > { %v1552_v32 = vsub.f32 %v1519_v60, %v1537_v31  ;;  %v1684_v31 = vadd.f32 %v3223_v57, %v1683_v56 }
 0x3a8   : > { %v3249_v33 = vpop.eup %3248  ;;  %v1559_v34 = vmul.f32 1.442695, %v1552_v32  ;;  %v1688_v32 = vpop.f32.mrf.mxu1 }
 0x3a9   : > { %v1569_v59 = vsel %vm1531_vm12, %v3249_v33, 0.0 }
 0x3aa   : > { %3250 = vpow2.f32 %v1559_v34  ;;  %1570 = vadd.xlane.f32.xlu0 %v1569_v59 }
 0x3ad   : > { %v1540_v36 = vpop.xlane.xlu2 %1539 }
 0x3ae   : > { %v1553_v38 = vsub.f32 %v1522_v0, %v1540_v36  ;;  %v1689_v36 = vadd.f32 %v3223_v57, %v1688_v32 }
 0x3b0   : > { %v3251_v39 = vpop.eup %3250  ;;  %v1561_v40 = vmul.f32 1.442695, %v1553_v38  ;;  %v1690_v34 = vpop.f32.mrf.mxu1 }
 0x3b1   : > { %v1572_v41 = vsel %vm1531_vm12, %v3251_v39, 0.0  ;;  %v1691_v59 = vadd.f32 %v3223_v57, %v1690_v34 }
 0x3b2   : > { %3252 = vpow2.f32 %v1561_v40  ;;  %1573 = vadd.xlane.f32.xlu1 %v1572_v41 }
 0x3b3   : > { %v1787_v38 = vpack.c.bf16 %v1691_v59, %v1689_v36 }
 0x3b5   : > { %v1543_v42 = vpop.xlane.xlu0 %1542 }
 0x3b6   : > { %v1554_v45 = vsub.f32 %v1524_v4, %v1543_v42 }
 0x3b8   : > { %v3253_v35 = vpop.eup %3252  ;;  %v1563_v46 = vmul.f32 1.442695, %v1554_v45 }
 0x3b9   : > { %v1575_v47 = vsel %vm1531_vm12, %v3253_v35, 0.0 }
 0x3ba   : > { %3254 = vpow2.f32 %v1563_v46  ;;  %1576 = vadd.xlane.f32.xlu2 %v1575_v47 }
 0x3bd   : > { %v1546_v48 = vpop.xlane.xlu1 %1545 }
 0x3be   : > { %v1555_v26 = vsub.f32 %v1527_v8, %v1546_v48 }
 0x3c0   : > { %v3255_v49 = vpop.eup %3254  ;;  %v1565_v50 = vmul.f32 1.442695, %v1555_v26 }
 0x3c1   : > { %v1578_v51 = vsel %vm1531_vm12, %v3255_v49, 0.0 }
 0x3c2   : > { %3256 = vpow2.f32 %v1565_v50  ;;  %1579 = vadd.xlane.f32.xlu0 %v1578_v51 }
 0x3c5   : > { %v1550_v52 = vpop.xlane.xlu2 %1549 }
 0x3c6   : > { %v1556_v53 = vsub.f32 %v1529_v44, %v1550_v52 }
 0x3c8   : > { %v3257_v55 = vpop.eup %3256  ;;  %v1567_v60 = vmul.f32 1.442695, %v1556_v53 }
 0x3c9   : > { %v1581_v61 = vsel %vm1531_vm12, %v3257_v55, 0.0 }
 0x3ca   : > { %3258 = vpow2.f32 %v1567_v60  ;;  %1582 = vadd.xlane.f32.xlu1 %v1581_v61 }
 0x3d0   : > { %v3259_v63 = vpop.eup %3258 }
 0x3d1   : > { %v1584_v0 = vsel %vm1547_vm13, %v3259_v63, 0.0 }
 0x3d2   : > { %1585 = vadd.xlane.f32.xlu2 %v1584_v0 }
 0x41d   : > { %v1571_v1 = vpop.xlane.xlu0 %1570 }
 0x41e   : > { %3260 = vrcp.f32 %v1571_v1 }
 0x424   : > { %v3261_v4 = vpop.eup %3260 }
 0x425   : > { %v1574_v3 = vpop.xlane.xlu1 %1573  ;;  %v1593_v7 = vmul.f32 %v3261_v4, %v3249_v33  ;;  %v1786_v33 = vpack.c.bf16 %v1686_v58, %v1684_v31 }
 0x426   : > { %3262 = vrcp.f32 %v1574_v3 }
 0x42c   : > { %v3263_v5 = vpop.eup %3262 }
 0x42d   : > { %v1594_v8 = vmul.f32 %v3263_v5, %v3251_v39  ;;  %v1577_v43 = vpop.xlane.xlu2 %1576  ;;  %v3176_v39 = vld [vmem:[%s3575_s1] sm:$0xff] }
 0x42e   : > { %3264 = vrcp.f32 %v1577_v43  ;;  %2008 = vmatpush.bf16.msrb.mxu3 %v3176_v39 }
 0x42f   : > { %v1599_v9 = vpack.c.bf16 %v1594_v8, %v1593_v7 }
 0x431   : > { %3023 = vmatmul.msk.bf16.vlgmr.msrb.gmra.mxu0 %vm1531_vm12, %v1599_v9 }
 0x434   : > { %v3265_v11 = vpop.eup %3264 }
 0x435   : > { %v1580_v44 = vpop.xlane.xlu0 %1579  ;;  %v1595_v13 = vmul.f32 %v3265_v11, %v3253_v35 }
 0x436   : > { %3266 = vrcp.f32 %v1580_v44 }
 0x43c   : > { %v3267_v12 = vpop.eup %3266 }
 0x43d   : > { %v1596_v14 = vmul.f32 %v3267_v12, %v3255_v49  ;;  %v1583_v16 = vpop.xlane.xlu1 %1582 }
 0x43e   : > { %3268 = vrcp.f32 %v1583_v16 }
 0x43f   : > { %v1600_v15 = vpack.c.bf16 %v1596_v14, %v1595_v13 }
 0x441   : > { %3024 = vmatmul.msk.bf16.gmra.mxu0 %vm1531_vm12, %v1600_v15 }
 0x444   : > { %v3269_v19 = vpop.eup %3268 }
 0x445   : > { %v1586_v17 = vpop.xlane.xlu2 %1585  ;;  %v1597_v21 = vmul.f32 %v3269_v19, %v3257_v55 }
 0x446   : > { %3270 = vrcp.f32 %v1586_v17 }
 0x44c   : > { %v3271_v20 = vpop.eup %3270 }
 0x44d   : > { %v1598_v22 = vmul.f32 %v3271_v20, %v3259_v63 }
 0x44f   : > { %v1601_v23 = vpack.c.bf16 %v1598_v22, %v1597_v21 }
 0x451   : > { %3025 = vmatmul.msk.bf16.gmra.mxu0 %vm1531_vm12, %v1601_v23 }
 0x461   : > { %3074 = vmatmul.msk.bf16.vlgmr.msra.gmra.mxu0 %vm1488_vm10, %v1785_v29 }
 0x471   : > { %3075 = vmatmul.msk.bf16.gmra.mxu0 %vm1488_vm10, %v1786_v33 }
 0x481   : > { %3076 = vmatmul.msk.bf16.gmra.mxu0 %vm1488_vm10, %v1787_v38 }
 0x4ae   : > { %v1627_v40 = vpop.f32.mrf.mxu0 }
 0x4b6   : > { %v1629_v41 = vpop.f32.mrf.mxu0 }
 0x4b7   : > { %v1642_v42 = vpack.c.bf16 %v1629_v41, %v1627_v40 }
 0x4b9   : > { %3093 = vmatmul.msk.bf16.vlgmr.msrb.gmra.mxu3 %vm1488_vm10, %v1642_v42  ;;  %v3183_v42 = vld [vmem:[%s3575_s1 + $0x8] sm:$0xff] }
 0x4ba   : > { %1969 = vmatpush.bf16.msrb.mxu2 %v3183_v42 }
 0x4be   : > { %v1632_v45 = vpop.f32.mrf.mxu0 }
 0x4c6   : > { %v1634_v35 = vpop.f32.mrf.mxu0 }
 0x4c7   : > { %v1643_v46 = vpack.c.bf16 %v1634_v35, %v1632_v45 }
 0x4c9   : > { %3094 = vmatmul.msk.bf16.gmra.mxu3 %vm1488_vm10, %v1643_v46 }
 0x4ce   : > { %v1637_v47 = vpop.f32.mrf.mxu0 }
 0x4d6   : > { %v1639_v48 = vpop.f32.mrf.mxu0 }
 0x4d7   : > { %v1644_v26 = vpack.c.bf16 %v1639_v48, %v1637_v47 }
 0x4d9   : > { %3095 = vmatmul.msk.bf16.gmra.mxu3 %vm1488_vm10, %v1644_v26 }
 0x4de   : > { %v1818_v49 = vpop.f32.mrf.mxu0 }
 0x4df   : > { %v1819_v50 = vadd.f32 %v1818_v49, %v3803_v27 }
 0x4e1   : > { %v1833_v51 = vsel %vm1531_vm12, %v1819_v50, -inf }
 0x4e2   : > { %1834 = vmax.xlane.f32.xlu0 %v1833_v51 }
 0x4e6   : > { %v1820_v52 = vpop.f32.mrf.mxu0 }
 0x4e7   : > { %v1821_v53 = vadd.f32 %v1820_v52, %v3810_v54 }
 0x4e9   : > { %v1836_v55 = vsel %vm1531_vm12, %v1821_v53, -inf }
 0x4ea   : > { %1837 = vmax.xlane.f32.xlu1 %v1836_v55 }
 0x4ee   : > { %v1823_v60 = vpop.f32.mrf.mxu0 }
 0x4ef   : > { %v1824_v61 = vadd.f32 %v1823_v60, %v3817_v62 }
 0x4f1   : > { %v1839_v63 = vsel %vm1531_vm12, %v1824_v61, -inf }
 0x4f2   : > { %1840 = vmax.xlane.f32.xlu2 %v1839_v63 }
 0x4f6   : > { %v1825_v0 = vpop.f32.mrf.mxu0 }
 0x4f7   : > { %v1826_v1 = vadd.f32 %v1825_v0, %v3824_v2 }
 0x4f9   : > { %v1842_v27 = vsel %vm1531_vm12, %v1826_v1, -inf }
 0x4fa   : > { %1843 = vmax.xlane.f32.xlu0 %v1842_v27 }
 0x4fe   : > { %v1828_v3 = vpop.f32.mrf.mxu0 }
 0x4ff   : > { %v1829_v4 = vadd.f32 %v1828_v3, %v3831_v6 }
 0x501   : > { %v1845_v54 = vsel %vm1531_vm12, %v1829_v4, -inf }
 0x502   : > { %1846 = vmax.xlane.f32.xlu1 %v1845_v54 }
 0x506   : > { %v1830_v5 = vpop.f32.mrf.mxu0 }
 0x507   : > { %v1831_v7 = vadd.f32 %v1830_v5, %v3838_v10 }
 0x509   : > { %v1848_v62 = vsel %vm1547_vm13, %v1831_v7, -inf }
 0x50a   : > { %1849 = vmax.xlane.f32.xlu2 %v1848_v62  ;;  %v3227_v62 = vld [vmem:[%s4316_s2] ss:$0 sm:$0xff]  ;;  %s4319_s2 = scalar_lea.vmem %s4247_s22, %s3525_s8  ;;  %s4320_s8 = sld [smem:[#allocation7_spill]] }
 0x510   : > { %p3145_p5 = scmp.ne.s32.totalorder %s4320_s8, 1 }
 0x511   : > { %s4321_s13 = sld [smem:[#allocation27_spill]] (!%p3145_p5) }
 0x512   : > { %s4322_s9 = sld [smem:[#allocation25_spill]] (!%p3145_p5) }
 0x513   : > { %s4323_s24 = sld [smem:[#allocation26_spill]] (!%p3145_p5) }
 0x514   : > { %s4324_s26 = sld [smem:[#allocation28_spill]] (!%p3145_p5) }
 0x555   : > { %v1835_v8 = vpop.xlane.xlu0 %1834 }
 0x556   : > { %v1851_v9 = vsub.f32 %v1819_v50, %v1835_v8 }
 0x558   : > { %v1857_v43 = vmul.f32 1.442695, %v1851_v9 }
 0x55a   : > { %3272 = vpow2.f32 %v1857_v43 }
 0x55d   : > { %v1838_v2 = vpop.xlane.xlu1 %1837 }
 0x55e   : > { %v1852_v44 = vsub.f32 %v1821_v53, %v1838_v2  ;;  %v3228_v2 = vld [vmem:[%s4317_s11] ss:$0 sm:$0xff] }
 0x560   : > { %v3273_v11 = vpop.eup %3272  ;;  %v1859_v12 = vmul.f32 1.442695, %v1852_v44 }
 0x561   : > { %v1869_v13 = vsel %vm1531_vm12, %v3273_v11, 0.0 }
 0x562   : > { %3274 = vpow2.f32 %v1859_v12  ;;  %1870 = vadd.xlane.f32.xlu0 %v1869_v13  ;;  %v3320_v12 = vld [vmem:[#allocation2] sm:$0xff] }
 0x565   : > { %v1841_v6 = vpop.xlane.xlu2 %1840 }
 0x566   : > { %v1853_v14 = vsub.f32 %v1824_v61, %v1841_v6 }
 0x568   : > { %v3275_v15 = vpop.eup %3274  ;;  %v1861_v16 = vmul.f32 1.442695, %v1853_v14 }
 0x569   : > { %v1872_v10 = vsel %vm1531_vm12, %v3275_v15, 0.0 }
 0x56a   : > { %3276 = vpow2.f32 %v1861_v16  ;;  %1873 = vadd.xlane.f32.xlu1 %v1872_v10 }
 0x56d   : > { %v1844_v17 = vpop.xlane.xlu0 %1843 }
 0x56e   : > { %v1854_v18 = vsub.f32 %v1826_v1, %v1844_v17 }
 0x570   : > { %v3277_v19 = vpop.eup %3276  ;;  %v1863_v20 = vmul.f32 1.442695, %v1854_v18  ;;  %v3321_v18 = vld [vmem:[#allocation2 + $0x8] sm:$0xff] }
 0x571   : > { %v1875_v21 = vsel %vm1531_vm12, %v3277_v19, 0.0 }
 0x572   : > { %3278 = vpow2.f32 %v1863_v20  ;;  %1876 = vadd.xlane.f32.xlu2 %v1875_v21 }
 0x575   : > { %v1847_v22 = vpop.xlane.xlu1 %1846 }
 0x576   : > { %v1855_v23 = vsub.f32 %v1829_v4, %v1847_v22 }
 0x578   : > { %v3279_v24 = vpop.eup %3278  ;;  %v1865_v57 = vmul.f32 1.442695, %v1855_v23 }
 0x579   : > { %v1878_v56 = vsel %vm1531_vm12, %v3279_v24, 0.0 }
 0x57a   : > { %3280 = vpow2.f32 %v1865_v57  ;;  %1879 = vadd.xlane.f32.xlu0 %v1878_v56  ;;  %v3322_v56 = vld [vmem:[#allocation2 + $0x10] sm:$0xff] }
 0x57d   : > { %v1850_v25 = vpop.xlane.xlu2 %1849 }
 0x57e   : > { %v1856_v28 = vsub.f32 %v1831_v7, %v1850_v25  ;;  %v2010_v7 = vpop.f32.mrf.mxu3 }
 0x580   : > { %v3281_v29 = vpop.eup %3280  ;;  %v1867_v30 = vmul.f32 1.442695, %v1856_v28 }
 0x581   : > { %v1881_v58 = vsel %vm1531_vm12, %v3281_v29, 0.0 }
 0x582   : > { %3282 = vpow2.f32 %v1867_v30  ;;  %1882 = vadd.xlane.f32.xlu1 %v1881_v58 }
 0x586   : > { %v2012_v8 = vpop.f32.mrf.mxu3 }
 0x588   : > { %v3283_v31 = vpop.eup %3282 }
 0x589   : > { %v1884_v32 = vsel %vm1547_vm13, %v3283_v31, 0.0 }
 0x58a   : > { %1885 = vadd.xlane.f32.xlu2 %v1884_v32 }
 0x58e   : > { %v2015_v16 = vpop.f32.mrf.mxu3 }
 0x5d5   : > { %v1871_v33 = vpop.xlane.xlu0 %1870 }
 0x5d6   : > { %3284 = vrcp.f32 %v1871_v33  ;;  %v3323_v33 = vld [vmem:[#allocation2 + $0x18] sm:$0xff] }
 0x5dc   : > { %v3285_v59 = vpop.eup %3284 }
 0x5dd   : > { %v1874_v34 = vpop.xlane.xlu1 %1873  ;;  %v1893_v38 = vmul.f32 %v3285_v59, %v3273_v11 }
 0x5de   : > { %3286 = vrcp.f32 %v1874_v34 }
 0x5e4   : > { %v3287_v36 = vpop.eup %3286 }
 0x5e5   : > { %v1894_v39 = vmul.f32 %v3287_v36, %v3275_v15  ;;  %v1877_v41 = vpop.xlane.xlu2 %1876 }
 0x5e6   : > { %3288 = vrcp.f32 %v1877_v41  ;;  %v3324_v41 = vld [vmem:[#allocation2 + $0x20] sm:$0xff] }
 0x5e7   : > { %v1899_v40 = vpack.c.bf16 %v1894_v39, %v1893_v38 }
 0x5e9   : > { %3077 = vmatmul.msk.bf16.vlgmr.msra.gmra.mxu1 %vm1531_vm12, %v1899_v40 }
 0x5ec   : > { %v3289_v35 = vpop.eup %3288 }
 0x5ed   : > { %v1880_v45 = vpop.xlane.xlu0 %1879  ;;  %v1895_v47 = vmul.f32 %v3289_v35, %v3277_v19 }
 0x5ee   : > { %3290 = vrcp.f32 %v1880_v45 }
 0x5f4   : > { %v3291_v46 = vpop.eup %3290 }
 0x5f5   : > { %v1896_v48 = vmul.f32 %v3291_v46, %v3279_v24  ;;  %v1883_v49 = vpop.xlane.xlu1 %1882  ;;  %v2017_v24 = vpop.f32.mrf.mxu3 }
 0x5f6   : > { %3292 = vrcp.f32 %v1883_v49  ;;  %v3325_v49 = vld [vmem:[#allocation2 + $0x28] sm:$0x3] }
 0x5f7   : > { %v1900_v26 = vpack.c.bf16 %v1896_v48, %v1895_v47 }
 0x5f9   : > { %3078 = vmatmul.msk.bf16.gmra.mxu1 %vm1531_vm12, %v1900_v26 }
 0x5fc   : > { %v3293_v51 = vpop.eup %3292 }
 0x5fd   : > { %v1886_v50 = vpop.xlane.xlu2 %1885  ;;  %v1897_v53 = vmul.f32 %v3293_v51, %v3281_v29  ;;  %v2020_v32 = vpop.f32.mrf.mxu3 }
 0x5fe   : > { %3294 = vrcp.f32 %v1886_v50 }
 0x604   : > { %v3295_v52 = vpop.eup %3294 }
 0x605   : > { %v1898_v55 = vmul.f32 %v3295_v52, %v3283_v31  ;;  %v2022_v45 = vpop.f32.mrf.mxu3 }
 0x607   : > { %v1901_v60 = vpack.c.bf16 %v1898_v55, %v1897_v53 }
 0x609   : > { %3079 = vmatmul.msk.bf16.gmra.mxu1 %vm1531_vm12, %v1901_v60 }
 0x666   : > { %v1926_v61 = vpop.f32.mrf.mxu1 }
 0x66e   : > { %v1928_v63 = vpop.f32.mrf.mxu1 }
 0x66f   : > { %v1941_v0 = vpack.c.bf16 %v1928_v63, %v1926_v61 }
 0x671   : > { %3086 = vmatmul.msk.bf16.vlgmr.msrb.gmra.mxu2 %vm1488_vm10, %v1941_v0 }
 0x676   : > { %v1931_v1 = vpop.f32.mrf.mxu1 }
 0x67e   : > { %v1933_v27 = vpop.f32.mrf.mxu1 }
 0x67f   : > { %v1942_v3 = vpack.c.bf16 %v1933_v27, %v1931_v1 }
 0x681   : > { %3087 = vmatmul.msk.bf16.gmra.mxu2 %vm1488_vm10, %v1942_v3 }
 0x686   : > { %v1936_v4 = vpop.f32.mrf.mxu1 }
 0x68e   : > { %v1938_v54 = vpop.f32.mrf.mxu1 }
 0x68f   : > { %v1943_v5 = vpack.c.bf16 %v1938_v54, %v1936_v4  ;;  %v3185_v54 = vld [vmem:[%s3592_s5 + $0x8] sm:$0xff] }
 0x690   : > { %2241 = vmatpush.bf16.msrb.mxu0 %v3185_v54 }
 0x691   : > { %3088 = vmatmul.msk.bf16.gmra.mxu2 %vm1488_vm10, %v1943_v5 }
 0x6f4   : > { %v1971_v9 = vpop.f32.mrf.mxu2 }
 0x6f5   : > { %v2011_v43 = vadd.f32 %v2010_v7, %v1971_v9 }
 0x6f7   : > { %v2029_v44 = vadd.f32 %v3227_v62, %v2011_v43 }
 0x6f9   : > { %v2039_v11 = vmul.f32 %v3228_v2, %v2029_v44 }
 0x6fb   : > { %v3896_v13 = vadd.f32 %v3320_v12, %v2039_v11 }
 0x6fc   : > { %v1973_v6 = vpop.f32.mrf.mxu2 }
 0x6fd   : > { %v2013_v14 = vadd.f32 %v2012_v8, %v1973_v6  ;;  %v2053_v15 = vsel %vm1173_vm3, %v3896_v13, 0.0 }
 0x6fe   : > { %2054 = vadd.xlane.f32.xlu0 %v2053_v15 }
 0x6ff   : > { %v2030_v10 = vadd.f32 %v3227_v62, %v2013_v14 }
 0x701   : > { %v2040_v17 = vmul.f32 %v3228_v2, %v2030_v10 }
 0x703   : > { %v3900_v19 = vadd.f32 %v3321_v18, %v2040_v17 }
 0x704   : > { %v1976_v20 = vpop.f32.mrf.mxu2 }
 0x705   : > { %v2016_v21 = vadd.f32 %v2015_v16, %v1976_v20  ;;  %v2056_v22 = vsel %vm1173_vm3, %v3900_v19, 0.0 }
 0x706   : > { %2057 = vadd.xlane.f32.xlu1 %v2056_v22 }
 0x707   : > { %v2031_v23 = vadd.f32 %v3227_v62, %v2016_v21 }
 0x709   : > { %v2041_v57 = vmul.f32 %v3228_v2, %v2031_v23 }
 0x70b   : > { %v3904_v25 = vadd.f32 %v3322_v56, %v2041_v57  ;;  %v3184_v57 = vld [vmem:[%s3592_s5] sm:$0xff] }
 0x70c   : > { %v1978_v28 = vpop.f32.mrf.mxu2  ;;  %2242 = vmatpush.bf16.msrb.mxu0 %v3184_v57 }
 0x70d   : > { %v2018_v29 = vadd.f32 %v2017_v24, %v1978_v28  ;;  %v2059_v30 = vsel %vm1173_vm3, %v3904_v25, 0.0 }
 0x70e   : > { %2060 = vadd.xlane.f32.xlu2 %v2059_v30 }
 0x70f   : > { %v2032_v58 = vadd.f32 %v3227_v62, %v2018_v29 }
 0x711   : > { %v2042_v31 = vmul.f32 %v3228_v2, %v2032_v58 }
 0x713   : > { %v3908_v34 = vadd.f32 %v3323_v33, %v2042_v31 }
 0x714   : > { %v1981_v59 = vpop.f32.mrf.mxu2 }
 0x715   : > { %v2021_v36 = vadd.f32 %v2020_v32, %v1981_v59  ;;  %v2062_v38 = vsel %vm1173_vm3, %v3908_v34, 0.0 }
 0x716   : > { %2063 = vadd.xlane.f32.xlu0 %v2062_v38 }
 0x717   : > { %v2033_v39 = vadd.f32 %v3227_v62, %v2021_v36 }
 0x719   : > { %v2043_v40 = vmul.f32 %v3228_v2, %v2033_v39 }
 0x71b   : > { %v3912_v42 = vadd.f32 %v3324_v41, %v2043_v40 }
 0x71c   : > { %v1983_v35 = vpop.f32.mrf.mxu2 }
 0x71d   : > { %v2023_v46 = vadd.f32 %v2022_v45, %v1983_v35  ;;  %v2065_v47 = vsel %vm1173_vm3, %v3912_v42, 0.0 }
 0x71e   : > { %2066 = vadd.xlane.f32.xlu1 %v2065_v47 }
 0x71f   : > { %v2034_v48 = vadd.f32 %v3227_v62, %v2023_v46 }
 0x721   : > { %v2044_v26 = vmul.f32 %v3228_v2, %v2034_v48 }
 0x723   : > { %v3916_v50 = vadd.f32 %v3325_v49, %v2044_v26 }
 0x725   : > { %v2068_v51 = vsel %vm1189_vm4, %v3916_v50, 0.0 }
 0x726   : > { %2069 = vadd.xlane.f32.xlu2 %v2068_v51  ;;  %v3973_v51 = vld [vmem:[%s4318_s25] ss:$0 sm:$0xff] }
 0x771   : > { %v2055_v52 = vpop.xlane.xlu0 %2054 }
 0x772   : > { %v2071_v53 = vmul.f32 %v2055_v52, %v3652_v37 }
 0x774   : > { %v3922_v55 = vsub.f32 %v3896_v13, %v2071_v53 }
 0x776   : > { %v2083_v60 = vmul.f32 %v3922_v55, %v3922_v55 }
 0x778   : > { %v2089_v61 = vsel %vm1173_vm3, %v2083_v60, 0.0 }
 0x779   : > { %v2058_v63 = vpop.xlane.xlu1 %2057  ;;  %2090 = vadd.xlane.f32.xlu0 %v2089_v61 }
 0x77a   : > { %v2072_v0 = vmul.f32 %v2058_v63, %v3652_v37 }
 0x77c   : > { %v3929_v1 = vsub.f32 %v3900_v19, %v2072_v0 }
 0x77e   : > { %v2084_v27 = vmul.f32 %v3929_v1, %v3929_v1 }
 0x780   : > { %v2092_v3 = vsel %vm1173_vm3, %v2084_v27, 0.0  ;;  %v3981_v27 = vld [vmem:[%s1062_s27] ss:$0 sm:$0xff] }
 0x781   : > { %v2061_v4 = vpop.xlane.xlu2 %2060  ;;  %2093 = vadd.xlane.f32.xlu1 %v2092_v3 }
 0x782   : > { %v2073_v5 = vmul.f32 %v2061_v4, %v3652_v37 }
 0x784   : > { %v3937_v7 = vsub.f32 %v3904_v25, %v2073_v5 }
 0x786   : > { %v2085_v62 = vmul.f32 %v3937_v7, %v3937_v7 }
 0x788   : > { %v2095_v8 = vsel %vm1173_vm3, %v2085_v62, 0.0 }
 0x789   : > { %v2064_v9 = vpop.xlane.xlu0 %2063  ;;  %2096 = vadd.xlane.f32.xlu2 %v2095_v8 }
 0x78a   : > { %v2074_v43 = vmul.f32 %v2064_v9, %v3652_v37 }
 0x78c   : > { %v3944_v2 = vsub.f32 %v3908_v34, %v2074_v43 }
 0x78e   : > { %v2086_v44 = vmul.f32 %v3944_v2, %v3944_v2 }
 0x790   : > { %v2098_v11 = vsel %vm1173_vm3, %v2086_v44, 0.0 }
 0x791   : > { %2099 = vadd.xlane.f32.xlu0 %v2098_v11  ;;  %v2067_v12 = vpop.xlane.xlu1 %2066 }
 0x792   : > { %v2075_v6 = vmul.f32 %v2067_v12, %v3652_v37 }
 0x794   : > { %v3951_v14 = vsub.f32 %v3912_v42, %v2075_v6 }
 0x796   : > { %v2087_v15 = vmul.f32 %v3951_v14, %v3951_v14 }
 0x798   : > { %v2101_v16 = vsel %vm1173_vm3, %v2087_v15, 0.0 }
 0x799   : > { %v2070_v10 = vpop.xlane.xlu2 %2069  ;;  %2102 = vadd.xlane.f32.xlu1 %v2101_v16 }
 0x79a   : > { %v2076_v17 = vmul.f32 %v2070_v10, %v3652_v37 }
 0x79c   : > { %v3958_v18 = vsub.f32 %v3916_v50, %v2076_v17 }
 0x79e   : > { %v2088_v20 = vmul.f32 %v3958_v18, %v3958_v18 }
 0x7a0   : > { %v2104_v21 = vsel %vm1189_vm4, %v2088_v20, 0.0 }
 0x7a1   : > { %2105 = vadd.xlane.f32.xlu2 %v2104_v21 }
 0x7ec   : > { %v2091_v22 = vpop.xlane.xlu0 %2090 }
 0x7ed   : > { %v2107_v23 = vmul.f32 %v2091_v22, %v3652_v37 }
 0x7ef   : > { %v2113_v24 = vadd.f32 1e-06, %v2107_v23 }
 0x7f1   : > { %3296 = vrsqrt.f32 %v2113_v24  ;;  %vm2125_vm15 = vweird.f32 %v2113_v24 }
 0x7f4   : > { %v2094_v56 = vpop.xlane.xlu1 %2093 }
 0x7f5   : > { %v2108_v28 = vmul.f32 %v2094_v56, %v3652_v37 }
 0x7f7   : > { %v3297_v29 = vpop.eup %3296  ;;  %v2114_v30 = vadd.f32 1e-06, %v2108_v28 }
 0x7f8   : > { %v2120_v58 = vmul.f32 %v3297_v29, %v2113_v24  ;;  %vm2126_vm14 = vweird.f32 %v3297_v29 }
 0x7f9   : > { %3298 = vrsqrt.f32 %v2114_v30  ;;  %vm2127_vm0 = vmor %vm2125_vm15, %vm2126_vm14  ;;  %vm2135_vm2 = vweird.f32 %v2114_v30 }
 0x7fa   : > { %v2121_v31 = vmul.f32 %v3297_v29, %v2120_v58 }
 0x7fc   : > { %v2122_v32 = vmul.f32 0.5, %v2121_v31  ;;  %v2097_v33 = vpop.xlane.xlu2 %2096 }
 0x7fd   : > { %v2109_v59 = vmul.f32 %v2097_v33, %v3652_v37 }
 0x7fe   : > { %v2123_v36 = vsub.f32 1.5, %v2122_v32 }
 0x7ff   : > { %v3299_v38 = vpop.eup %3298  ;;  %v2115_v39 = vadd.f32 1e-06, %v2109_v59 }
 0x800   : > { %v2124_v40 = vmul.f32 %v3297_v29, %v2123_v36  ;;  %v2130_v41 = vmul.f32 %v3299_v38, %v2114_v30  ;;  %vm2136_vm1 = vweird.f32 %v3299_v38 }
 0x801   : > { %3300 = vrsqrt.f32 %v2115_v39  ;;  %vm2137_vm5 = vmor %vm2135_vm2, %vm2136_vm1  ;;  %vm2145_vm7 = vweird.f32 %v2115_v39 }
 0x802   : > { %v2131_v45 = vmul.f32 %v3299_v38, %v2130_v41  ;;  %v2128_v35 = vsel %vm2127_vm0, %v3297_v29, %v2124_v40 }
 0x803   : > { %v2179_v52 = vmul.f32 %v2128_v35, %v3922_v55 }
 0x804   : > { %v2132_v46 = vmul.f32 0.5, %v2131_v45  ;;  %v2100_v47 = vpop.xlane.xlu0 %2099 }
 0x805   : > { %v2110_v48 = vmul.f32 %v2100_v47, %v3652_v37  ;;  %v2188_v3 = vmul.f32 %v3973_v51, %v2179_v52 }
 0x806   : > { %v2133_v26 = vsub.f32 1.5, %v2132_v46 }
 0x807   : > { %v3301_v49 = vpop.eup %3300  ;;  %v2116_v53 = vadd.f32 1e-06, %v2110_v48  ;;  %v2197_v43 = vadd.f32 %v3981_v27, %v2188_v3  ;;  %v3192_v3 = vld [vmem:[%s3606_s4 + $0x30] sm:$0xff] }
 0x808   : > { %v2134_v60 = vmul.f32 %v3299_v38, %v2133_v26  ;;  %v2140_v61 = vmul.f32 %v3301_v49, %v2115_v39  ;;  %vm2146_vm6 = vweird.f32 %v3301_v49 }
 0x809   : > { %3302 = vrsqrt.f32 %v2116_v53  ;;  %vm2147_vm8 = vmor %vm2145_vm7, %vm2146_vm6  ;;  %vm2155_vm10 = vweird.f32 %v2116_v53 }
 0x80a   : > { %v2138_v63 = vsel %vm2137_vm5, %v3299_v38, %v2134_v60  ;;  %v2141_v0 = vmul.f32 %v3301_v49, %v2140_v61 }
 0x80b   : > { %v2180_v4 = vmul.f32 %v2138_v63, %v3929_v1 }
 0x80c   : > { %v2142_v54 = vmul.f32 0.5, %v2141_v0  ;;  %v2103_v55 = vpop.xlane.xlu1 %2102  ;;  %v3193_v0 = vld [vmem:[%s3606_s4 + $0x38] sm:$0xff] }
 0x80d   : > { %v2189_v5 = vmul.f32 %v3973_v51, %v2180_v4  ;;  %v2111_v62 = vmul.f32 %v2103_v55, %v3652_v37  ;;  %2594 = vmatpush.bf16.msrb.mxu1 %v3193_v0 }
 0x80e   : > { %v2143_v8 = vsub.f32 1.5, %v2142_v54 }
 0x80f   : > { %v3303_v9 = vpop.eup %3302  ;;  %v2198_v44 = vadd.f32 %v3981_v27, %v2189_v5  ;;  %v2117_v11 = vadd.f32 1e-06, %v2111_v62 }
 0x810   : > { %v2144_v12 = vmul.f32 %v3301_v49, %v2143_v8  ;;  %v2150_v6 = vmul.f32 %v3303_v9, %v2116_v53  ;;  %vm2156_vm9 = vweird.f32 %v3303_v9  ;;  %v3191_v8 = vld [vmem:[%s3606_s4 + $0x28] sm:$0xff] }
 0x811   : > { %3304 = vrsqrt.f32 %v2117_v11  ;;  %v2203_v15 = vpack.c.bf16 %v2198_v44, %v2197_v43  ;;  %vm2157_vm11 = vmor %vm2155_vm10, %vm2156_vm9  ;;  %vm2165_vm13 = vweird.f32 %v2117_v11  ;;  %2595 = vmatpush.bf16.msrb.mxu1 %v3192_v3 }
 0x812   : > { %v2151_v1 = vmul.f32 %v3303_v9, %v2150_v6  ;;  %v2148_v16 = vsel %vm2147_vm8, %v3301_v49, %v2144_v12 }
 0x813   : > { %3104 = vmatmul.msk.bf16.vlgmr.msrb.gmra.mxu0 %vm1173_vm3, %v2203_v15  ;;  %v2181_v23 = vmul.f32 %v2148_v16, %v3937_v7  ;;  %v3190_v15 = vld [vmem:[%s3606_s4 + $0x20] sm:$0xff] }
 0x814   : > { %v2152_v10 = vmul.f32 0.5, %v2151_v1  ;;  %v2106_v17 = vpop.xlane.xlu2 %2105 }
 0x815   : > { %v2112_v20 = vmul.f32 %v2106_v17, %v3652_v37  ;;  %v2190_v58 = vmul.f32 %v3973_v51, %v2181_v23  ;;  %2596 = vmatpush.bf16.msrb.mxu1 %v3191_v8 }
 0x816   : > { %v2153_v21 = vsub.f32 1.5, %v2152_v10 }
 0x817   : > { %v3305_v22 = vpop.eup %3304  ;;  %v2118_v24 = vadd.f32 1e-06, %v2112_v20  ;;  %v2199_v36 = vadd.f32 %v3981_v27, %v2190_v58 }
 0x818   : > { %v2154_v57 = vmul.f32 %v3303_v9, %v2153_v21  ;;  %v2160_v56 = vmul.f32 %v3305_v22, %v2117_v11  ;;  %vm2166_vm12 = vweird.f32 %v3305_v22 }
 0x819   : > { %3306 = vrsqrt.f32 %v2118_v24  ;;  %vm2167_vm14 = vmor %vm2165_vm13, %vm2166_vm12  ;;  %vm2175_vm0 = vweird.f32 %v2118_v24  ;;  %2597 = vmatpush.bf16.msrb.mxu1 %v3190_v15 }
 0x81a   : > { %v2158_v28 = vsel %vm2157_vm11, %v3303_v9, %v2154_v57  ;;  %v2161_v29 = vmul.f32 %v3305_v22, %v2160_v56 }
 0x81b   : > { %v2182_v30 = vmul.f32 %v2158_v28, %v3944_v2 }
 0x81c   : > { %v2162_v31 = vmul.f32 0.5, %v2161_v29 }
 0x81d   : > { %v2191_v32 = vmul.f32 %v3973_v51, %v2182_v30 }
 0x81e   : > { %v2163_v33 = vsub.f32 1.5, %v2162_v31 }
 0x81f   : > { %v3307_v59 = vpop.eup %3306  ;;  %v2200_v7 = vadd.f32 %v3981_v27, %v2191_v32 }
 0x820   : > { %v2164_v38 = vmul.f32 %v3305_v22, %v2163_v33  ;;  %v2170_v39 = vmul.f32 %v3307_v59, %v2118_v24  ;;  %vm2176_vm15 = vweird.f32 %v3307_v59  ;;  %v3189_v24 = vld [vmem:[%s3606_s4 + $0x18] sm:$0xff] }
 0x821   : > { %v2204_v40 = vpack.c.bf16 %v2200_v7, %v2199_v36  ;;  %vm2177_vm1 = vmor %vm2175_vm0, %vm2176_vm15  ;;  %2598 = vmatpush.bf16.msrb.mxu1 %v3189_v24 }
 0x822   : > { %v2171_v41 = vmul.f32 %v3307_v59, %v2170_v39  ;;  %v2168_v2 = vsel %vm2167_vm14, %v3305_v22, %v2164_v38 }
 0x823   : > { %3105 = vmatmul.msk.bf16.gmra.mxu0 %vm1173_vm3, %v2204_v40  ;;  %v2183_v46 = vmul.f32 %v2168_v2, %v3951_v14  ;;  %v4010_v14 = vld [vmem:[%s1070_s23] ss:$0 sm:$0xff] }
 0x824   : > { %v2172_v45 = vmul.f32 0.5, %v2171_v41 }
 0x825   : > { %v2192_v49 = vmul.f32 %v3973_v51, %v2183_v46 }
 0x826   : > { %v2173_v35 = vsub.f32 1.5, %v2172_v45 }
 0x827   : > { %v2201_v53 = vadd.f32 %v3981_v27, %v2192_v49 }
 0x828   : > { %v2174_v47 = vmul.f32 %v3307_v59, %v2173_v35 }
 0x82a   : > { %v2178_v48 = vsel %vm2177_vm1, %v3307_v59, %v2174_v47  ;;  %v3188_v59 = vld [vmem:[%s3606_s4 + $0x10] sm:$0xff] }
 0x82b   : > { %v2184_v26 = vmul.f32 %v2178_v48, %v3958_v18  ;;  %2599 = vmatpush.bf16.msrb.mxu1 %v3188_v59  ;;  %v3187_v48 = vld [vmem:[%s3606_s4 + $0x8] sm:$0xff] }
 0x82d   : > { %v2193_v52 = vmul.f32 %v3973_v51, %v2184_v26 }
 0x82f   : > { %v2202_v60 = vadd.f32 %v3981_v27, %v2193_v52  ;;  %2600 = vmatpush.bf16.msrb.mxu1 %v3187_v48 }
 0x831   : > { %v2205_v61 = vpack.c.bf16 %v2202_v60, %v2201_v53 }
 0x833   : > { %3106 = vmatmul.msk.bf16.gmra.mxu0 %vm1173_vm3, %v2205_v61 }
 0x890   : > { %v2244_v63 = vpop.f32.mrf.mxu0 }
 0x891   : > { %v4013_v18 = vadd.f32 %v4010_v14, %v2244_v63 }
 0x893   : > { %v4017_v51 = vmul.f32 0.70710677, %v4013_v18 }
 0x895   : > { %v2271_v27 = vmul.f32 %v4017_v51, %v4017_v51 }
 0x897   : > { %v4022_v4 = vmin.f32 %v2271_v27, 16.0  ;;  %v3186_v27 = vld [vmem:[%s3606_s4] sm:$0xff] }
 0x898   : > { %v2246_v54 = vpop.f32.mrf.mxu0  ;;  %2601 = vmatpush.bf16.msrb.mxu1 %v3186_v27 }
 0x899   : > { %v2273_v55 = vmul.f32 2.1237322e-06, %v4022_v4  ;;  %v2284_v5 = vmul.f32 3.8918573e-05, %v4022_v4  ;;  %v4027_v62 = vadd.f32 %v4010_v14, %v2246_v54 }
 0x89b   : > { %v2274_v9 = vadd.f32 0.00028619796, %v2273_v55  ;;  %v2285_v43 = vadd.f32 0.001143296, %v2284_v5  ;;  %v4031_v44 = vmul.f32 0.70710677, %v4027_v62 }
 0x89d   : > { %v2275_v11 = vmul.f32 %v2274_v9, %v4022_v4  ;;  %v2286_v12 = vmul.f32 %v2285_v43, %v4022_v4  ;;  %v2311_v6 = vmul.f32 %v4031_v44, %v4031_v44 }
 0x89f   : > { %v2287_v1 = vadd.f32 0.014752088, %v2286_v12  ;;  %v4038_v16 = vmin.f32 %v2311_v6, 16.0  ;;  %v2276_v17 = vadd.f32 0.0036580483, %v2275_v11 }
 0x8a0   : > { %v2249_v10 = vpop.f32.mrf.mxu0 }
 0x8a1   : > { %v2288_v20 = vmul.f32 %v2287_v1, %v4022_v4  ;;  %v4042_v21 = vadd.f32 %v4010_v14, %v2249_v10  ;;  %v2313_v22 = vmul.f32 2.1237322e-06, %v4038_v16  ;;  %v2324_v23 = vmul.f32 3.8918573e-05, %v4038_v16 }
 0x8a2   : > { %v2277_v30 = vmul.f32 %v2276_v17, %v4022_v4 }
 0x8a3   : > { %v2289_v57 = vadd.f32 0.112945676, %v2288_v20  ;;  %v2314_v56 = vadd.f32 0.00028619796, %v2313_v22  ;;  %v2325_v28 = vadd.f32 0.001143296, %v2324_v23 }
 0x8a4   : > { %v4048_v29 = vmul.f32 0.70710677, %v4042_v21  ;;  %v2278_v41 = vadd.f32 0.05243302, %v2277_v30 }
 0x8a5   : > { %v2290_v58 = vmul.f32 %v2289_v57, %v4022_v4  ;;  %v2315_v31 = vmul.f32 %v2314_v56, %v4038_v16  ;;  %v2326_v32 = vmul.f32 %v2325_v28, %v4038_v16 }
 0x8a6   : > { %v2351_v33 = vmul.f32 %v4048_v29, %v4048_v29  ;;  %v2279_v60 = vmul.f32 %v2278_v41, %v4022_v4 }
 0x8a7   : > { %v2291_v36 = vadd.f32 0.4994258, %v2290_v58  ;;  %v2316_v7 = vadd.f32 0.0036580483, %v2315_v31  ;;  %v2327_v38 = vadd.f32 0.014752088, %v2326_v32 }
 0x8a8   : > { %v4057_v39 = vmin.f32 %v2351_v33, 16.0  ;;  %v2251_v40 = vpop.f32.mrf.mxu0  ;;  %v2280_v8 = vadd.f32 0.18741608, %v2279_v60 }
 0x8a9   : > { %v2292_v2 = vmul.f32 %v2291_v36, %v4022_v4  ;;  %v4061_v45 = vadd.f32 %v4010_v14, %v2251_v40  ;;  %v2317_v35 = vmul.f32 %v2316_v7, %v4038_v16  ;;  %v2328_v46 = vmul.f32 %v2327_v38, %v4038_v16 }
 0x8aa   : > { %v2353_v47 = vmul.f32 2.1237322e-06, %v4057_v39  ;;  %v2364_v52 = vmul.f32 3.8918573e-05, %v4057_v39  ;;  %v2281_v23 = vmul.f32 %v2280_v8, %v4022_v4 }
 0x8ab   : > { %v2293_v26 = vadd.f32 1.0, %v2292_v2  ;;  %v4068_v49 = vmul.f32 0.70710677, %v4061_v45  ;;  %v2329_v53 = vadd.f32 0.112945676, %v2328_v46 }
 0x8ac   : > { %v2318_v61 = vadd.f32 0.05243302, %v2317_v35  ;;  %v2354_v0 = vadd.f32 0.00028619796, %v2353_v47  ;;  %v2365_v54 = vadd.f32 0.001143296, %v2364_v52 }
 0x8ad   : > { %3308 = vrcp.f32 %v2293_v26  ;;  %v2330_v63 = vmul.f32 %v2329_v53, %v4038_v16  ;;  %v2391_v3 = vmul.f32 %v4068_v49, %v4068_v49  ;;  %v2303_v58 = vand.u32 2147483647, %v2293_v26 }
 0x8ae   : > { %v2366_v11 = vmul.f32 %v2365_v54, %v4057_v39  ;;  %v2319_v12 = vmul.f32 %v2318_v61, %v4038_v16  ;;  %v2355_v15 = vmul.f32 %v2354_v0, %v4057_v39  ;;  %v2305_v31 = vand.u32 2147483648, %v2293_v26 }
 0x8af   : > { %v2331_v55 = vadd.f32 0.4994258, %v2330_v63  ;;  %v4076_v9 = vmin.f32 %v2391_v3, 16.0  ;;  %v2282_v4 = vadd.f32 1.1283791, %v2281_v23  ;;  %vm2299_vm5 = vweird.f32 %v2293_v26 }
 0x8b0   : > { %v2254_v5 = vpop.f32.mrf.mxu0  ;;  %v2367_v57 = vadd.f32 0.014752088, %v2366_v11  ;;  %v2320_v28 = vadd.f32 0.18741608, %v2319_v12  ;;  %v2356_v30 = vadd.f32 0.0036580483, %v2355_v15 }
 0x8b1   : > { %v4079_v43 = vadd.f32 %v4010_v14, %v2254_v5  ;;  %v2332_v6 = vmul.f32 %v2331_v55, %v4038_v16  ;;  %v2393_v22 = vmul.f32 2.1237322e-06, %v4076_v9  ;;  %v2404_v7 = vmul.f32 3.8918573e-05, %v4076_v9 }
 0x8b2   : > { %v2368_v36 = vmul.f32 %v2367_v57, %v4057_v39  ;;  %v2321_v41 = vmul.f32 %v2320_v28, %v4038_v16  ;;  %v2357_v2 = vmul.f32 %v2356_v30, %v4057_v39  ;;  %v2306_v46 = vor.u32 1.1754944e-38, %v2305_v31 }
 0x8b3   : > { %v3309_v1 = vpop.eup %3308  ;;  %v4086_v10 = vmul.f32 0.70710677, %v4079_v43  ;;  %v4088_v20 = vadd.f32 1.0, %v2332_v6  ;;  %v2394_v33 = vadd.f32 0.00028619796, %v2393_v22  ;;  %vm2304_vm7 = vcmp.eq.f32.partialorder %v2303_v58, 8.507059e+37 }
 0x8b4   : > { %v2295_v17 = vmul.f32 %v3309_v1, %v2293_v26  ;;  %vm2300_vm2 = vweird.f32 %v3309_v1  ;;  %v2369_v47 = vadd.f32 0.112945676, %v2368_v36  ;;  %v2405_v48 = vadd.f32 0.001143296, %v2404_v7 }
 0x8b5   : > { %v2431_v24 = vmul.f32 %v4086_v10, %v4086_v10  ;;  %3310 = vrcp.f32 %v4088_v20  ;;  %vm2301_vm6 = vmor %vm2299_vm5, %vm2300_vm2  ;;  %v2395_v26 = vmul.f32 %v2394_v33, %v4076_v9  ;;  %v2283_v16 = vmul.f32 %v2282_v4, %v4017_v51 }
 0x8b6   : > { %v2296_v56 = vsub.f32 1.0, %v2295_v17  ;;  %v2322_v0 = vadd.f32 1.1283791, %v2321_v41  ;;  %v2343_v27 = vand.u32 2147483647, %v4088_v20  ;;  %v2345_v5 = vand.u32 2147483648, %v4088_v20 }
 0x8b7   : > { %v4097_v38 = vmin.f32 %v2431_v24, 16.0  ;;  %v2358_v3 = vadd.f32 0.05243302, %v2357_v2  ;;  %v2370_v8 = vmul.f32 %v2369_v47, %v4057_v39  ;;  %v2406_v11 = vmul.f32 %v2405_v48, %v4076_v9 }
 0x8b8   : > { %v2297_v32 = vmul.f32 %v3309_v1, %v2296_v56  ;;  %v2256_v59 = vpop.f32.mrf.mxu0  ;;  %v2396_v12 = vadd.f32 0.0036580483, %v2395_v26  ;;  %v2323_v23 = vmul.f32 %v2322_v0, %v4031_v44  ;;  %vm2339_vm9 = vweird.f32 %v4088_v20 }
 0x8b9   : > { %v4102_v35 = vadd.f32 %v4010_v14, %v2256_v59  ;;  %v2444_v14 = vmul.f32 3.8918573e-05, %v4097_v38  ;;  %v2433_v6 = vmul.f32 2.1237322e-06, %v4097_v38  ;;  %v2407_v17 = vadd.f32 0.014752088, %v2406_v11 }
 0x8ba   : > { %v2298_v40 = vadd.f32 %v3309_v1, %v2297_v32  ;;  %vm2344_vm10 = vcmp.eq.f32.partialorder %v2343_v27, 8.507059e+37  ;;  %v2346_v31 = vor.u32 1.1754944e-38, %v2345_v5  ;;  %v2397_v32 = vmul.f32 %v2396_v12, %v4076_v9 }
 0x8bb   : > { %v3311_v52 = vpop.eup %3310  ;;  %v4107_v60 = vmul.f32 0.70710677, %v4102_v35  ;;  %v2445_v22 = vadd.f32 0.001143296, %v2444_v14  ;;  %v2408_v28 = vmul.f32 %v2407_v17, %v4076_v9  ;;  %v2434_v33 = vadd.f32 0.00028619796, %v2433_v6 }
 0x8bc   : > { %v2302_v53 = vsel %vm2301_vm6, %v3309_v1, %v2298_v40  ;;  %v2335_v63 = vmul.f32 %v3311_v52, %v4088_v20  ;;  %vm2340_vm8 = vweird.f32 %v3311_v52  ;;  %v2371_v1 = vadd.f32 0.4994258, %v2370_v8 }
 0x8bd   : > { %v2307_v61 = vsel %vm2304_vm7, %v2306_v46, %v2302_v53  ;;  %v2471_v54 = vmul.f32 %v4107_v60, %v4107_v60  ;;  %v2446_v30 = vmul.f32 %v2445_v22, %v4097_v38  ;;  %vm2341_vm11 = vmor %vm2339_vm9, %vm2340_vm8  ;;  %v2409_v20 = vadd.f32 0.112945676, %v2408_v28 }
 0x8be   : > { %v2336_v55 = vsub.f32 1.0, %v2335_v63  ;;  %v2308_v51 = vmul.f32 %v2307_v61, %v2283_v16  ;;  %v2372_v56 = vmul.f32 %v2371_v1, %v4057_v39  ;;  %v2359_v41 = vmul.f32 %v2358_v3, %v4057_v39 }
 0x8bf   : > { %v4121_v24 = vmin.f32 %v2471_v54, 16.0  ;;  %v2447_v36 = vadd.f32 0.014752088, %v2446_v30  ;;  %v2398_v2 = vadd.f32 0.05243302, %v2397_v32  ;;  %v2435_v46 = vmul.f32 %v2434_v33, %v4097_v38 }
 0x8c0   : > { %v2337_v15 = vmul.f32 %v3311_v52, %v2336_v55  ;;  %v3107_v58 = vclamps-f32 %v2308_v51, 1.0  ;;  %v4128_v59 = vadd.f32 1.0, %v2372_v56  ;;  %v2410_v53 = vmul.f32 %v2409_v20, %v4076_v9 }
 0x8c1   : > { %v2473_v4 = vmul.f32 2.1237322e-06, %v4121_v24  ;;  %v2259_v26 = vmul.f32 0.5, %v4013_v18  ;;  %v2484_v61 = vmul.f32 3.8918573e-05, %v4121_v24  ;;  %v2260_v63 = vmul.f32 0.5, %v4027_v62 }
 0x8c2   : > { %v2338_v57 = vadd.f32 %v3311_v52, %v2337_v15  ;;  %3312 = vrcp.f32 %v4128_v59  ;;  %v2511_v47 = vadd.f32 1.0, %v3107_v58  ;;  %v2411_v0 = vadd.f32 0.4994258, %v2410_v53 }
 0x8c3   : > { %v2474_v16 = vadd.f32 0.00028619796, %v2473_v4  ;;  %v2360_v3 = vadd.f32 0.18741608, %v2359_v41  ;;  %v2399_v54 = vmul.f32 %v2398_v2, %v4076_v9  ;;  %v2436_v55 = vadd.f32 0.0036580483, %v2435_v46 }
 0x8c4   : > { %v2342_v44 = vsel %vm2341_vm11, %v3311_v52, %v2338_v57  ;;  %v2448_v52 = vmul.f32 %v2447_v36, %v4097_v38  ;;  %v2485_v5 = vadd.f32 0.001143296, %v2484_v61  ;;  %v2517_v11 = vmul.f32 %v2511_v47, %v2259_v26 }
 0x8c5   : > { %v2347_v7 = vsel %vm2344_vm10, %v2346_v31, %v2342_v44  ;;  %v2412_v12 = vmul.f32 %v2411_v0, %v4076_v9  ;;  %v2475_v6 = vmul.f32 %v2474_v16, %v4121_v24  ;;  %v2361_v57 = vmul.f32 %v2360_v3, %v4057_v39 }
 0x8c6   : > { %v2348_v40 = vmul.f32 %v2347_v7, %v2323_v23  ;;  %v2449_v27 = vadd.f32 0.112945676, %v2448_v52  ;;  %v2486_v22 = vmul.f32 %v2485_v5, %v4121_v24  ;;  %v2400_v56 = vadd.f32 0.18741608, %v2399_v54 }
 0x8c7   : > { %v2413_v1 = vadd.f32 1.0, %v2412_v12  ;;  %v2437_v28 = vmul.f32 %v2436_v55, %v4097_v38  ;;  %v2476_v32 = vadd.f32 0.0036580483, %v2475_v6  ;;  %vm2379_vm13 = vweird.f32 %v4128_v59 }
 0x8c8   : > { %v3108_v48 = vclamps-f32 %v2348_v40, 1.0  ;;  %v3313_v8 = vpop.eup %3312  ;;  %v2450_v18 = vmul.f32 %v2449_v27, %v4097_v38  ;;  %v2487_v31 = vadd.f32 0.014752088, %v2486_v22  ;;  %v2385_v33 = vand.u32 2147483648, %v4128_v59 }
 0x8c9   : > { %v2375_v15 = vmul.f32 %v3313_v8, %v4128_v59  ;;  %3314 = vrcp.f32 %v2413_v1  ;;  %vm2380_vm12 = vweird.f32 %v3313_v8  ;;  %v2383_v20 = vand.u32 2147483647, %v4128_v59 }
 0x8ca   : > { %v2512_v14 = vadd.f32 1.0, %v3108_v48  ;;  %v2451_v17 = vadd.f32 0.4994258, %v2450_v18  ;;  %v2488_v39 = vmul.f32 %v2487_v31, %v4121_v24  ;;  %v2362_v7 = vadd.f32 1.1283791, %v2361_v57  ;;  %vm2381_vm14 = vmor %vm2379_vm13, %vm2380_vm12 }
 0x8cb   : > { %v2376_v23 = vsub.f32 1.0, %v2375_v15  ;;  %v2401_v4 = vmul.f32 %v2400_v56, %v4076_v9  ;;  %v2438_v40 = vadd.f32 0.05243302, %v2437_v28  ;;  %v2477_v46 = vmul.f32 %v2476_v32, %v4121_v24 }
 0x8cc   : > { %v2518_v51 = vmul.f32 %v2512_v14, %v2260_v63  ;;  %v2452_v58 = vmul.f32 %v2451_v17, %v4097_v38  ;;  %v2386_v47 = vor.u32 1.1754944e-38, %v2385_v33  ;;  %v2489_v48 = vadd.f32 0.112945676, %v2488_v39 }
 0x8cd   : > { %v2377_v30 = vmul.f32 %v3313_v8, %v2376_v23  ;;  %vm2384_vm15 = vcmp.eq.f32.partialorder %v2383_v20, 8.507059e+37  ;;  %v2363_v26 = vmul.f32 %v2362_v7, %v4048_v29  ;;  %v2402_v16 = vadd.f32 1.1283791, %v2401_v4 }
 0x8ce   : > { %v2523_v62 = vpack.c.bf16 %v2518_v51, %v2517_v11  ;;  %v4151_v36 = vadd.f32 1.0, %v2452_v58  ;;  %v2490_v52 = vmul.f32 %v2489_v48, %v4121_v24  ;;  %v2439_v61 = vmul.f32 %v2438_v40, %v4097_v38 }
 0x8cf   : > { %v2378_v44 = vadd.f32 %v3313_v8, %v2377_v30  ;;  %v3315_v2 = vpop.eup %3314  ;;  %v2478_v63 = vadd.f32 0.05243302, %v2477_v46  ;;  %v2425_v14 = vand.u32 2147483648, %v2413_v1  ;;  %v2423_v55 = vand.u32 2147483647, %v2413_v1 }
 0x8d0   : > { %2602 = vmatmul.bf16.vlgmr.msrb.gmra.mxu1 %v2523_v62  ;;  %3316 = vrcp.f32 %v4151_v36  ;;  %v2415_v53 = vmul.f32 %v3315_v2, %v2413_v1  ;;  %v2491_v0 = vadd.f32 0.4994258, %v2490_v52  ;;  %vm2420_vm0 = vweird.f32 %v3315_v2 }
 0x8d1   : > { %v2382_v41 = vsel %vm2381_vm14, %v3313_v8, %v2378_v44  ;;  %v2440_v11 = vadd.f32 0.18741608, %v2439_v61  ;;  %vm2419_vm1 = vweird.f32 %v2413_v1  ;;  %v2479_v29 = vmul.f32 %v2478_v63, %v4121_v24 }
 0x8d2   : > { %v2387_v59 = vsel %vm2384_vm15, %v2386_v47, %v2382_v41  ;;  %v2416_v9 = vsub.f32 1.0, %v2415_v53  ;;  %v2492_v8 = vmul.f32 %v2491_v0, %v4121_v24  ;;  %vm2421_vm2 = vmor %vm2419_vm1, %vm2420_vm0  ;;  %v2426_v12 = vor.u32 1.1754944e-38, %v2425_v14 }
 0x8d3   : > { %v2388_v3 = vmul.f32 %v2387_v59, %v2363_v26  ;;  %v2403_v15 = vmul.f32 %v2402_v16, %v4068_v49  ;;  %vm2424_vm5 = vcmp.eq.f32.partialorder %v2423_v55, 8.507059e+37  ;;  %v2441_v57 = vmul.f32 %v2440_v11, %v4097_v38  ;;  %v3233_v11 = vld [vmem:[%s4319_s2] ss:$0 sm:$0xff] }
 0x8d4   : > { %v2417_v54 = vmul.f32 %v3315_v2, %v2416_v9  ;;  %v2493_v6 = vadd.f32 1.0, %v2492_v8  ;;  %v2480_v28 = vadd.f32 0.18741608, %v2479_v29  ;;  %v2465_v30 = vand.u32 2147483648, %v4151_v36 }
 0x8d5   : > { %v3109_v62 = vclamps-f32 %v2388_v3, 1.0  ;;  %vm2459_vm7 = vweird.f32 %v4151_v36  ;;  %v2463_v49 = vand.u32 2147483647, %v4151_v36  ;;  %v2261_v32 = vmul.f32 0.5, %v4042_v21 }
 0x8d6   : > { %v3317_v27 = vpop.eup %3316  ;;  %v2418_v51 = vadd.f32 %v3315_v2, %v2417_v54  ;;  %3318 = vrcp.f32 %v2493_v6  ;;  %v2262_v33 = vmul.f32 0.5, %v4061_v45  ;;  %v2442_v44 = vadd.f32 1.1283791, %v2441_v57 }
 0x8d7   : > { %v2455_v5 = vmul.f32 %v3317_v27, %v4151_v36  ;;  %vm2460_vm6 = vweird.f32 %v3317_v27  ;;  %v2513_v31 = vadd.f32 1.0, %v3109_v62  ;;  %v2481_v7 = vmul.f32 %v2480_v28, %v4121_v24 }
 0x8d8   : > { %v2422_v17 = vsel %vm2421_vm2, %v3315_v2, %v2418_v51  ;;  %vm2461_vm8 = vmor %vm2459_vm7, %vm2460_vm6  ;;  %v2466_v4 = vor.u32 1.1754944e-38, %v2465_v30  ;;  %vm2464_vm9 = vcmp.eq.f32.partialorder %v2463_v49, 8.507059e+37  ;;  %v2443_v47 = vmul.f32 %v2442_v44, %v4086_v10 }
 0x8d9   : > { %v2456_v18 = vsub.f32 1.0, %v2455_v5  ;;  %v2427_v22 = vsel %vm2424_vm5, %v2426_v12, %v2422_v17  ;;  %v2519_v40 = vmul.f32 %v2513_v31, %v2261_v32  ;;  %v2482_v21 = vadd.f32 1.1283791, %v2481_v7 }
 0x8da   : > { %v2428_v56 = vmul.f32 %v2427_v22, %v2403_v15  ;;  %v2505_v53 = vand.u32 2147483648, %v2493_v6  ;;  %v2503_v52 = vand.u32 2147483647, %v2493_v6  ;;  %vm2499_vm11 = vweird.f32 %v2493_v6 }
 0x8db   : > { %v2457_v23 = vmul.f32 %v3317_v27, %v2456_v18  ;;  %v2483_v16 = vmul.f32 %v2482_v21, %v4107_v60  ;;  %v2264_v3 = vmul.f32 0.5, %v4102_v35  ;;  %v3232_v60 = vld [vmem:[%s1078_s6] ss:$0 sm:$0xff] }
 0x8dc   : > { %v3110_v58 = vclamps-f32 %v2428_v56, 1.0  ;;  %v3319_v39 = vpop.eup %3318  ;;  %v2506_v24 = vor.u32 1.1754944e-38, %v2505_v53  ;;  %vm2504_vm13 = vcmp.eq.f32.partialorder %v2503_v52, 8.507059e+37 }
 0x8dd   : > { %v2458_v1 = vadd.f32 %v3317_v27, %v2457_v23  ;;  %v2495_v2 = vmul.f32 %v3319_v39, %v2493_v6  ;;  %vm2500_vm10 = vweird.f32 %v3319_v39 }
 0x8de   : > { %v2514_v20 = vadd.f32 1.0, %v3110_v58  ;;  %vm2501_vm12 = vmor %vm2499_vm11, %vm2500_vm10 }
 0x8df   : > { %v2462_v38 = vsel %vm2461_vm8, %v3317_v27, %v2458_v1  ;;  %v2496_v48 = vsub.f32 1.0, %v2495_v2  ;;  %v2263_v27 = vmul.f32 0.5, %v4079_v43 }
 0x8e0   : > { %v2520_v41 = vmul.f32 %v2514_v20, %v2262_v33  ;;  %v2467_v46 = vsel %vm2464_vm9, %v2466_v4, %v2462_v38 }
 0x8e1   : > { %v2468_v45 = vmul.f32 %v2467_v46, %v2443_v47  ;;  %v2497_v59 = vmul.f32 %v3319_v39, %v2496_v48 }
 0x8e2   : > { %v2524_v36 = vpack.c.bf16 %v2520_v41, %v2519_v40 }
 0x8e3   : > { %v2498_v26 = vadd.f32 %v3319_v39, %v2497_v59  ;;  %v3111_v61 = vclamps-f32 %v2468_v45, 1.0 }
 0x8e4   : > { %2607 = vmatmul.bf16.gmra.mxu1 %v2524_v36 }
 0x8e5   : > { %v2502_v9 = vsel %vm2501_vm12, %v3319_v39, %v2498_v26  ;;  %v2515_v0 = vadd.f32 1.0, %v3111_v61 }
 0x8e6   : > { %v2507_v10 = vsel %vm2504_vm13, %v2506_v24, %v2502_v9 }
 0x8e7   : > { %v2508_v63 = vmul.f32 %v2507_v10, %v2483_v16  ;;  %v2521_v55 = vmul.f32 %v2515_v0, %v2263_v27 }
 0x8e9   : > { %v3112_v14 = vclamps-f32 %v2508_v63, 1.0 }
 0x8eb   : > { %v2516_v54 = vadd.f32 1.0, %v3112_v14 }
 0x8ed   : > { %v2522_v5 = vmul.f32 %v2516_v54, %v2264_v3 }
 0x8ef   : > { %v2525_v8 = vpack.c.bf16 %v2522_v5, %v2521_v55 }
 0x8f4   : > { %2612 = vmatmul.bf16.gmra.mxu1 %v2525_v8 }
 0x94d   : > { %v2603_v51 = vpop.f32.mrf.mxu1 }
 0x94e   : > { %v2604_v29 = vadd.f32 %v3232_v60, %v2603_v51 }
 0x950   : > { %v2622_v43 = vmul.f32 %v3233_v11, %v2604_v29 }
 0x952   : > { %v2628_v35 = vadd.f32 %v2622_v43, %v3896_v13 }
 0x954   : > { %2634 = vst.msk [vmem:[#allocation2] sm:$0xff] %vm1173_vm3, %v2628_v35 }
 0x955   : > { %v2605_v12 = vpop.f32.mrf.mxu1 }
 0x956   : > { %v2606_v18 = vadd.f32 %v3232_v60, %v2605_v12 }
 0x958   : > { %v2623_v6 = vmul.f32 %v3233_v11, %v2606_v18 }
 0x95a   : > { %v2629_v15 = vadd.f32 %v2623_v6, %v3900_v19 }
 0x95c   : > { %2635 = vst.msk [vmem:[#allocation2 + $0x8] sm:$0xff] %vm1173_vm3, %v2629_v15 }
 0x961   : > { %v2608_v62 = vpop.f32.mrf.mxu1 }
 0x962   : > { %v2609_v17 = vadd.f32 %v3232_v60, %v2608_v62 }
 0x964   : > { %v2624_v22 = vmul.f32 %v3233_v11, %v2609_v17 }
 0x966   : > { %v2630_v23 = vadd.f32 %v2624_v22, %v3904_v25 }
 0x968   : > { %2636 = vst.msk [vmem:[#allocation2 + $0x10] sm:$0xff] %vm1173_vm3, %v2630_v23 }
 0x969   : > { %v2610_v57 = vpop.f32.mrf.mxu1 }
 0x96a   : > { %v2611_v56 = vadd.f32 %v3232_v60, %v2610_v57 }
 0x96c   : > { %v2625_v28 = vmul.f32 %v3233_v11, %v2611_v56 }
 0x96e   : > { %v2631_v13 = vadd.f32 %v2625_v28, %v3908_v34 }
 0x970   : > { %2637 = vst.msk [vmem:[#allocation2 + $0x18] sm:$0xff] %vm1173_vm3, %v2631_v13 }
 0x971   : > { %v2613_v1 = vpop.f32.mrf.mxu1 }
 0x972   : > { %v2614_v30 = vadd.f32 %v3232_v60, %v2613_v1 }
 0x974   : > { %v2626_v58 = vmul.f32 %v3233_v11, %v2614_v30 }
 0x976   : > { %v2632_v19 = vadd.f32 %v2626_v58, %v3912_v42 }
 0x978   : > { %2638 = vst.msk [vmem:[#allocation2 + $0x20] sm:$0xff] %vm1173_vm3, %v2632_v19 }
 0x979   : > { %v2615_v31 = vpop.f32.mrf.mxu1 }
 0x97a   : > { %v2616_v49 = vadd.f32 %v3232_v60, %v2615_v31 }
 0x97c   : > { %v2627_v32 = vmul.f32 %v3233_v11, %v2616_v49  ;;  %2643 = sbr.rel (%p3145_p5) target bundleno = 2840 (0xb18), region = 136 }
 0x97e   : > { %v2633_v25 = vadd.f32 %v2627_v32, %v3916_v50 }
 0x980   : > { %2639 = vst.msk [vmem:[#allocation2 + $0x28] sm:$0x3] %vm1189_vm4, %v2633_v25 }
 0x981   : > { %v2645_v34 = vrot.slane %v2630_v23, 4  ;;  %vm2647_vm14 = vcmask 1040384   ;;  %v3195_v50 = vld [vmem:[%s4321_s13 + $0x8] sm:$0xff]  ;;  %v3194_v4 = vld [vmem:[%s4321_s13] sm:$0xff]  ;;  %vm2718_vm1 = vcmask 33792  }
 0x982   : > { %2711 = vmatpush.bf16.msra.mxu0 %v3195_v50  ;;  %v3326_v45 = vld [vmem:[%s4322_s9] ss:$0 sm:$0xff] }
 0x983   : > { %v2648_v33 = vsel %vm2647_vm14, %v2628_v35, %v2645_v34  ;;  %v3328_v61 = vld [vmem:[%s4324_s26] ss:$0 sm:$0xff] }
 0x984   : > { %v2651_v44 = vsel %vm1189_vm4, %v2648_v33, 0.0 }
 0x985   : > { %2652 = vadd.xlane.f32.xlu0 %v2651_v44 }
 0x986   : > { %2712 = vmatpush.bf16.msra.mxu0 %v3194_v4 }
 0x9f8   : > { %v2653_v20 = vpop.xlane.xlu0 %2652 }
 0x9f9   : > { %v2654_v42 = vmul.f32 %v2653_v20, %v3652_v37 }
 0x9fb   : > { %v2655_v38 = vsub.f32 %v2648_v33, %v2654_v42 }
 0x9fd   : > { %v2656_v39 = vmul.f32 %v2655_v38, %v2655_v38 }
 0x9ff   : > { %v2657_v7 = vsel %vm1189_vm4, %v2656_v39, 0.0 }
 0xa00   : > { %2658 = vadd.xlane.f32.xlu0 %v2657_v7 }
 0xa73   : > { %v2659_v40 = vpop.xlane.xlu0 %2658 }
 0xa74   : > { %v2660_v41 = vmul.f32 %v2659_v40, %v3652_v37  ;;  %v3327_v37 = vld [vmem:[%s4323_s24] ss:$0 sm:$0xff] }
 0xa76   : > { %v2661_v2 = vadd.f32 1e-06, %v2660_v41 }
 0xa78   : > { %3329 = vrsqrt.f32 %v2661_v2  ;;  %vm2668_vm15 = vweird.f32 %v2661_v2 }
 0xa7e   : > { %v3330_v46 = vpop.eup %3329 }
 0xa7f   : > { %v2663_v47 = vmul.f32 %v3330_v46, %v2661_v2  ;;  %vm2669_vm4 = vweird.f32 %v3330_v46 }
 0xa80   : > { %vm2670_vm0 = vmor %vm2668_vm15, %vm2669_vm4 }
 0xa81   : > { %v2664_v36 = vmul.f32 %v3330_v46, %v2663_v47 }
 0xa83   : > { %v2665_v48 = vmul.f32 0.5, %v2664_v36 }
 0xa85   : > { %v2666_v21 = vsub.f32 1.5, %v2665_v48 }
 0xa87   : > { %v2667_v53 = vmul.f32 %v3330_v46, %v2666_v21 }
 0xa89   : > { %v2671_v59 = vsel %vm2670_vm0, %v3330_v46, %v2667_v53 }
 0xa8a   : > { %v2672_v52 = vmul.f32 %v2671_v59, %v2655_v38 }
 0xa8c   : > { %v2676_v26 = vmul.f32 %v3326_v45, %v2672_v52 }
 0xa8e   : > { %v2680_v24 = vadd.f32 %v3327_v37, %v2676_v26 }
 0xa90   : > { %v2681_v16 = vpack.c.bf16 %v2680_v24, %v2680_v24 }
 0xa92   : > { %3154 = vmatmul.msk.bf16.vlgmr.msra.gmra.mxu0 %vm1173_vm3, %v2681_v16 }
 0xb0f   : > { %v2714_v9 = vpop.f32.mrf.mxu0 }
 0xb10   : > { %v2715_v10 = vadd.f32 %v3328_v61, %v2714_v9 }
 0xb12   : > { %2719 = vst.msk [vmem:[#allocation3] sm:$0x3] %vm2718_vm1, %v2715_v10 }
 0xb17   : > { %v2716_v63 = vpop.f32.mrf.mxu0 }
 0xb18 PF: > { %s4325_s1 = sld [smem:[#allocation7_spill]]  ;;  %s3372_s2 = smov [#allocation3]  }
 0xb19   : > { %s2726_s8 = sshll.u32 %s3372_s2, 4  ;;  %s4326_s11 = sld [smem:[#allocation29_spill]]  ;;  %s2727_s8 = int_to_ptr.vmem [resolvable:$true] %s2726_s8 }
 0xb1e   : > { %p3207_p6 = scmp.eq.s32.totalorder %s4325_s1, 1 }
 0xb1f   : > { %s2728_s5 = sshll.u32 %s4326_s11, 4  ;;  %s2729_s5 = int_to_ptr.hbm [resolvable:$true] %s2728_s5 }
 0xb20   : > { %3204 = dma.vmem_to_hbm [thread:$0]  (%p3207_p6), %s2727_s8, 32, %s2729_s5, [#allocation4]  }
 0xb21   : > { %3364 = dma.done.wait (%p3207_p6), [#allocation4], 32  }
 0xb22   : > { %3366 = vsyncadd (%p3207_p6), [#allocation4], 4294967264 }
 0xb23 PF: > { %s4327_s7 = sld [smem:[#allocation6_spill]] }
 0xb29   : > { %s38_s7 = sadd.s32 1, %s4327_s7  }
 0xb2a   : > { %p35_p7 = scmp.ge.s32.totalorder %s38_s7, 4  }
 0xb2c   :  { %37 = sbr.rel (!%p35_p7) target bundleno = 21 (0x15), region = 221 }
 0xb31   :  { %2742 = vsyncpa [#allocation4], 1 }
 0xb32   :  { %2744 = vsyncpa [#allocation4 + $0x1], 1 }

</bundles_post_ra>
